<compile_context>
chip_gen: v7x
topology: tpu7x:2x2x1
jax: 0.10.0
libtpu: 0.0.40
codegen_flags: <defaults>
</compile_context>

<pallas_src>
import functools

import jax
import jax.numpy as jnp
from jax.experimental import pallas as pl
from jax.experimental.pallas import tpu as pltpu


# ----------------------------------------------------------------------------
# Fused mid-block kernel (one batch element per grid step, everything in VMEM).
# ----------------------------------------------------------------------------
def _make_midblock_kernel(C, H, W, groups, eps, num_resnets, output_scale_factor):
    HW = H * W
    cpg = C // groups
    inv_n = 1.0 / float(cpg * HW)
    inv_scale = 1.0 / float(output_scale_factor)
    taps = [(dy, dx) for dy in (-1, 0, 1) for dx in (-1, 0, 1)]
    hp = jax.lax.Precision.HIGHEST

    def kernel(x_ref, gnp_ref, convw_ref, convb_ref, o_ref):
        f32 = jnp.float32
        x = x_ref[0].astype(f32)                      # (C, HW): spatial on lanes

        # --- "same group" one-hot matrix, built in-kernel (no DMA'd operand) ---
        ci = jax.lax.broadcasted_iota(jnp.int32, (C, C), 0)
        cj = jax.lax.broadcasted_iota(jnp.int32, (C, C), 1)
        same = None
        for g in range(groups):
            lo, hi = g * cpg, (g + 1) * cpg
            term = (ci >= lo) & (ci < hi) & (cj >= lo) & (cj < hi)
            same = term if same is None else (same | term)
        gmat = same.astype(f32)                       # (C, C)

        # --- static tap shifts + boundary masks on the flat HW lane axis ------
        pos = jax.lax.broadcasted_iota(jnp.int32, (1, HW), 1)
        if (W & (W - 1)) == 0:
            col = pos & (W - 1)                       # pos % W (power-of-two W)
        else:
            col = pos % W                             # TODO(synk): general-W fallback
        tap_shift, tap_mask = [], []
        for dy, dx in taps:
            off = dy * W + dx
            tap_shift.append((-off) % HW)
            m = None
            if dy == -1:
                m = pos >= W
            elif dy == 1:
                m = pos < (H - 1) * W
            if dx == -1:
                c = col >= 1
                m = c if m is None else (m & c)
            elif dx == 1:
                c = col <= W - 2
                m = c if m is None else (m & c)
            tap_mask.append(m)

        def group_norm_silu(a, gamma, beta):
            # Two-pass statistics in full f32 (mean, then centered 2nd moment).
            gsum = jax.lax.dot_general(gmat, a, (((1,), (0,)), ((), ())),
                                       precision=hp, preferred_element_type=f32)
            mean = jnp.sum(gsum, axis=1, keepdims=True) * inv_n       # (C, 1)
            d = a - mean
            gsq = jax.lax.dot_general(gmat, d * d, (((1,), (0,)), ((), ())),
                                      precision=hp, preferred_element_type=f32)
            var = jnp.sum(gsq, axis=1, keepdims=True) * inv_n         # (C, 1)
            y = d * jax.lax.rsqrt(var + eps)
            y = y * gamma + beta
            return y * jax.nn.sigmoid(y)                              # swish

        def conv3x3_same(a, w, b):
            # im2col on the flat HW axis: 9 rolled + edge-masked copies of the
            # (C, HW) activation stacked on sublanes -> one MXU matmul.
            pieces = []
            for shift, m in zip(tap_shift, tap_mask):
                shifted = a if shift == 0 else pltpu.roll(a, shift, 1)
                pieces.append(shifted if m is None else jnp.where(m, shifted, 0.0))
            patches = jnp.concatenate(pieces, axis=0)                 # (9C, HW)
            out = jax.lax.dot_general(                                # bf16 in, f32 acc
                w.astype(jnp.bfloat16), patches.astype(jnp.bfloat16),
                (((1,), (0,)), ((), ())), preferred_element_type=f32)
            return out + b                                            # (C, HW)

        # TODO(synk): temb is None in this forward config; the resnets'
        #             time_emb_proj path is skipped (matches PyTorch when temb is None).
        # TODO(synk): is_init_image/temporal_chunk causal-cache handling has no
        #             effect for a pure 2D (N, C, H, W) forward; dropout p=0.0 is identity.
        h = x
        for r in range(num_resnets):
            g1 = gnp_ref[4 * r + 0].astype(f32)
            b1 = gnp_ref[4 * r + 1].astype(f32)
            g2 = gnp_ref[4 * r + 2].astype(f32)
            b2 = gnp_ref[4 * r + 3].astype(f32)
            t = group_norm_silu(h, g1, b1)
            t = conv3x3_same(t, convw_ref[2 * r + 0], convb_ref[2 * r + 0].astype(f32))
            t = group_norm_silu(t, g2, b2)
            t = conv3x3_same(t, convw_ref[2 * r + 1], convb_ref[2 * r + 1].astype(f32))
            h = h + t                      # identity shortcut (in == out channels)
            if inv_scale != 1.0:
                h = h * inv_scale
        o_ref[0] = h.astype(o_ref.dtype)

    return kernel


# ----------------------------------------------------------------------------
# Public wrapper: NCHW in -> NCHW out (only free reshapes at the boundary).
# ----------------------------------------------------------------------------
def mid_block_forward(x_nchw, params, *, groups, eps=1e-6, output_scale_factor=1.0):
    N, C, H, W = x_nchw.shape
    HW = H * W
    gn, cw, cb = params["gn"], params["conv_w"], params["conv_b"]
    num_resnets = cw.shape[0] // 2
    assert gn.shape == (num_resnets * 4, C, 1)
    assert cw.shape == (num_resnets * 2, C, 9 * C)
    assert cb.shape == (num_resnets * 2, C, 1)

    x = x_nchw.reshape(N, C, HW)          # channels on sublanes, spatial on lanes

    kernel = _make_midblock_kernel(C, H, W, groups, float(eps), num_resnets,
                                   float(output_scale_factor))
    out = pl.pallas_call(
        kernel,
        out_shape=jax.ShapeDtypeStruct((N, C, HW), x_nchw.dtype),
        grid=(N,),
        in_specs=[
            pl.BlockSpec((1, C, HW), lambda n: (n, 0, 0)),
            pl.BlockSpec((num_resnets * 4, C, 1), lambda n: (0, 0, 0)),
            pl.BlockSpec((num_resnets * 2, C, 9 * C), lambda n: (0, 0, 0)),
            pl.BlockSpec((num_resnets * 2, C, 1), lambda n: (0, 0, 0)),
        ],
        out_specs=pl.BlockSpec((1, C, HW), lambda n: (n, 0, 0)),
        compiler_params=pltpu.CompilerParams(
            dimension_semantics=("parallel",)),    # one image per TC on v7x megacore
    )(x, gn, cw, cb)
    return out.reshape(N, C, H, W)


# ----------------------------------------------------------------------------
# Deterministic synthetic parameters.
#   gn:     (R*4, C, 1)   rows per resnet: [gamma1, beta1, gamma2, beta2]
#   conv_w: (R*2, C, 9*C) row 2r+j = conv_{j+1} weight, flattened as
#           w[c_out, (ky*3+kx)*C + c_in]   (3x3 same-padded conv)
#   conv_b: (R*2, C, 1)
# ----------------------------------------------------------------------------
def init_params(key, channels, num_resnets=2):
    C, R = channels, num_resnets
    k = jax.random.split(key, 4)
    gammas = 1.0 + 0.1 * jax.random.normal(k[0], (R, 2, C, 1), jnp.float32)
    betas = 0.1 * jax.random.normal(k[1], (R, 2, C, 1), jnp.float32)
    gn = jnp.stack([gammas[:, 0], betas[:, 0], gammas[:, 1], betas[:, 1]],
                   axis=1).reshape(R * 4, C, 1)
    conv_w = 0.1 * jax.random.normal(k[2], (R * 2, C, 9 * C), jnp.float32)
    conv_b = 0.1 * jax.random.normal(k[3], (R * 2, C, 1), jnp.float32)
    return {"gn": gn, "conv_w": conv_w, "conv_b": conv_b}


# ----------------------------------------------------------------------------
# Pure-JAX reference (correctness check only). Convs also use bf16 inputs with
# f32 accumulation so both sides see the same MXU rounding of the inputs.
# ----------------------------------------------------------------------------
def _ref_group_norm_silu(x, gamma, beta, groups, eps):
    N, C, H, W = x.shape
    xg = x.reshape(N, groups, C // groups, H, W)
    mean = xg.mean(axis=(2, 3, 4), keepdims=True)
    var = xg.var(axis=(2, 3, 4), keepdims=True)
    y = ((xg - mean) * jax.lax.rsqrt(var + eps)).reshape(N, C, H, W)
    y = y * gamma.reshape(1, C, 1, 1) + beta.reshape(1, C, 1, 1)
    return y * jax.nn.sigmoid(y)


def _ref_conv3x3_same(x, wflat, b):
    cout = wflat.shape[0]
    cin = wflat.shape[1] // 9
    w_hwio = wflat.reshape(cout, 3, 3, cin).transpose(1, 2, 3, 0)
    y = jax.lax.conv_general_dilated(
        x.astype(jnp.bfloat16), w_hwio.astype(jnp.bfloat16),
        window_strides=(1, 1), padding=((1, 1), (1, 1)),
        dimension_numbers=("NCHW", "HWIO", "NCHW"),
        preferred_element_type=jnp.float32)
    return y + b.reshape(1, cout, 1, 1)


def _ref_forward(x, params, *, groups, eps=1e-6, output_scale_factor=1.0):
    gn, cw, cb = params["gn"], params["conv_w"], params["conv_b"]
    num_resnets = cw.shape[0] // 2
    h = x
    for r in range(num_resnets):
        t = _ref_group_norm_silu(h, gn[4 * r + 0], gn[4 * r + 1], groups, eps)
        t = _ref_conv3x3_same(t, cw[2 * r + 0], cb[2 * r + 0])
        t = _ref_group_norm_silu(t, gn[4 * r + 2], gn[4 * r + 3], groups, eps)
        t = _ref_conv3x3_same(t, cw[2 * r + 1], cb[2 * r + 1])
        h = (h + t) / output_scale_factor
    return h


if __name__ == "__main__":
    key = jax.random.PRNGKey(0)
    k_x, k_p = jax.random.split(key)

    # ActionCausalUNetMidBlock2D(in_channels=8, temb_channels=None, num_layers=1,
    #                            resnet_groups=4, resnet_eps=1e-6, act='swish')
    N, C, H, W, GROUPS, EPS = 2, 8, 16, 16, 4, 1e-6
    x = jax.random.normal(k_x, (N, C, H, W), jnp.float32)        # NCHW input
    params = init_params(k_p, C, num_resnets=2)

    fwd = jax.jit(functools.partial(mid_block_forward, groups=GROUPS, eps=EPS))
    out = jax.block_until_ready(fwd(x, params))
    assert out.shape == (N, C, H, W), out.shape

    ref = _ref_forward(x, params, groups=GROUPS, eps=EPS)
    # Both sides run conv matmuls with bf16 inputs / f32 accumulation (single
    # MXU pass, per perf review); tolerance covers bf16 rounding-boundary
    # divergence between the two formulations across four chained convs.
    max_err = float(jnp.max(jnp.abs(out - ref)))
    assert jnp.allclose(out, ref, atol=1e-2, rtol=1e-2), max_err

    print("KERNEL_OK")
</pallas_src>

<mosaic_0001>
module attributes {stable_mosaic.version = 11 : i64} {
  func.func @kernel(%arg0: i32, %arg1: memref<1x8x256xf32, #tpu.memory_space<vmem>>, %arg2: memref<8x8x1xf32, #tpu.memory_space<vmem>>, %arg3: memref<4x8x72xf32, #tpu.memory_space<vmem>>, %arg4: memref<4x8x1xf32, #tpu.memory_space<vmem>>, %arg5: memref<1x8x256xf32, #tpu.memory_space<vmem>>) attributes {dimension_semantics = [#tpu.dimension_semantics<parallel>], iteration_bounds = array<i64: 2>, scalar_prefetch = 0 : i64, scratch_operands = 0 : i64, tpu.core_type = #tpu.core_type<tc>, window_params = [{transform_indices = @transform_0, window_bounds = array<i64: 1, 8, 256>}, {pipeline_mode = #tpu.pipeline_mode<synchronous>, transform_indices = @transform_1, window_bounds = array<i64: 8, 8, 1>}, {pipeline_mode = #tpu.pipeline_mode<synchronous>, transform_indices = @transform_2, window_bounds = array<i64: 4, 8, 72>}, {pipeline_mode = #tpu.pipeline_mode<synchronous>, transform_indices = @transform_3, window_bounds = array<i64: 4, 8, 1>}, {transform_indices = @transform_4, window_bounds = array<i64: 1, 8, 256>}]} {
    %c0 = arith.constant 0 : index
    %c0_0 = arith.constant 0 : index
    %c0_1 = arith.constant 0 : index
    %0 = vector.load %arg1[%c0, %c0_0, %c0_1] : memref<1x8x256xf32, #tpu.memory_space<vmem>>, vector<1x8x256xf32>
    %1 = vector.shape_cast %0 : vector<1x8x256xf32> to vector<8x256xf32>
    %2 = tpu.iota {dimensions = array<i32: 0>} : vector<8x8xi32>
    %3 = tpu.iota {dimensions = array<i32: 1>} : vector<8x8xi32>
    %c0_i32 = arith.constant 0 : i32
    %4 = vector.broadcast %c0_i32 : i32 to vector<8x8xi32>
    %5 = arith.cmpi sge, %2, %4 : vector<8x8xi32>
    %c2_i32 = arith.constant 2 : i32
    %6 = vector.broadcast %c2_i32 : i32 to vector<8x8xi32>
    %7 = arith.cmpi slt, %2, %6 : vector<8x8xi32>
    %8 = arith.andi %5, %7 : vector<8x8xi1>
    %c0_i32_2 = arith.constant 0 : i32
    %9 = vector.broadcast %c0_i32_2 : i32 to vector<8x8xi32>
    %10 = arith.cmpi sge, %3, %9 : vector<8x8xi32>
    %11 = arith.andi %8, %10 : vector<8x8xi1>
    %c2_i32_3 = arith.constant 2 : i32
    %12 = vector.broadcast %c2_i32_3 : i32 to vector<8x8xi32>
    %13 = arith.cmpi slt, %3, %12 : vector<8x8xi32>
    %14 = arith.andi %11, %13 : vector<8x8xi1>
    %c2_i32_4 = arith.constant 2 : i32
    %15 = vector.broadcast %c2_i32_4 : i32 to vector<8x8xi32>
    %16 = arith.cmpi sge, %2, %15 : vector<8x8xi32>
    %c4_i32 = arith.constant 4 : i32
    %17 = vector.broadcast %c4_i32 : i32 to vector<8x8xi32>
    %18 = arith.cmpi slt, %2, %17 : vector<8x8xi32>
    %19 = arith.andi %16, %18 : vector<8x8xi1>
    %c2_i32_5 = arith.constant 2 : i32
    %20 = vector.broadcast %c2_i32_5 : i32 to vector<8x8xi32>
    %21 = arith.cmpi sge, %3, %20 : vector<8x8xi32>
    %22 = arith.andi %19, %21 : vector<8x8xi1>
    %c4_i32_6 = arith.constant 4 : i32
    %23 = vector.broadcast %c4_i32_6 : i32 to vector<8x8xi32>
    %24 = arith.cmpi slt, %3, %23 : vector<8x8xi32>
    %25 = arith.andi %22, %24 : vector<8x8xi1>
    %26 = arith.ori %14, %25 : vector<8x8xi1>
    %c4_i32_7 = arith.constant 4 : i32
    %27 = vector.broadcast %c4_i32_7 : i32 to vector<8x8xi32>
    %28 = arith.cmpi sge, %2, %27 : vector<8x8xi32>
    %c6_i32 = arith.constant 6 : i32
    %29 = vector.broadcast %c6_i32 : i32 to vector<8x8xi32>
    %30 = arith.cmpi slt, %2, %29 : vector<8x8xi32>
    %31 = arith.andi %28, %30 : vector<8x8xi1>
    %c4_i32_8 = arith.constant 4 : i32
    %32 = vector.broadcast %c4_i32_8 : i32 to vector<8x8xi32>
    %33 = arith.cmpi sge, %3, %32 : vector<8x8xi32>
    %34 = arith.andi %31, %33 : vector<8x8xi1>
    %c6_i32_9 = arith.constant 6 : i32
    %35 = vector.broadcast %c6_i32_9 : i32 to vector<8x8xi32>
    %36 = arith.cmpi slt, %3, %35 : vector<8x8xi32>
    %37 = arith.andi %34, %36 : vector<8x8xi1>
    %38 = arith.ori %26, %37 : vector<8x8xi1>
    %c6_i32_10 = arith.constant 6 : i32
    %39 = vector.broadcast %c6_i32_10 : i32 to vector<8x8xi32>
    %40 = arith.cmpi sge, %2, %39 : vector<8x8xi32>
    %c8_i32 = arith.constant 8 : i32
    %41 = vector.broadcast %c8_i32 : i32 to vector<8x8xi32>
    %42 = arith.cmpi slt, %2, %41 : vector<8x8xi32>
    %43 = arith.andi %40, %42 : vector<8x8xi1>
    %c6_i32_11 = arith.constant 6 : i32
    %44 = vector.broadcast %c6_i32_11 : i32 to vector<8x8xi32>
    %45 = arith.cmpi sge, %3, %44 : vector<8x8xi32>
    %46 = arith.andi %43, %45 : vector<8x8xi1>
    %c8_i32_12 = arith.constant 8 : i32
    %47 = vector.broadcast %c8_i32_12 : i32 to vector<8x8xi32>
    %48 = arith.cmpi slt, %3, %47 : vector<8x8xi32>
    %49 = arith.andi %46, %48 : vector<8x8xi1>
    %50 = arith.ori %38, %49 : vector<8x8xi1>
    %51 = arith.extui %50 : vector<8x8xi1> to vector<8x8xi32>
    %52 = arith.sitofp %51 : vector<8x8xi32> to vector<8x8xf32>
    %53 = tpu.iota {dimensions = array<i32: 1>} : vector<1x256xi32>
    %c15_i32 = arith.constant 15 : i32
    %54 = vector.broadcast %c15_i32 : i32 to vector<1x256xi32>
    %55 = arith.andi %53, %54 : vector<1x256xi32>
    %c16_i32 = arith.constant 16 : i32
    %56 = vector.broadcast %c16_i32 : i32 to vector<1x256xi32>
    %57 = arith.cmpi sge, %53, %56 : vector<1x256xi32>
    %c1_i32 = arith.constant 1 : i32
    %58 = vector.broadcast %c1_i32 : i32 to vector<1x256xi32>
    %59 = arith.cmpi sge, %55, %58 : vector<1x256xi32>
    %60 = arith.andi %57, %59 : vector<1x256xi1>
    %c16_i32_13 = arith.constant 16 : i32
    %61 = vector.broadcast %c16_i32_13 : i32 to vector<1x256xi32>
    %62 = arith.cmpi sge, %53, %61 : vector<1x256xi32>
    %c16_i32_14 = arith.constant 16 : i32
    %63 = vector.broadcast %c16_i32_14 : i32 to vector<1x256xi32>
    %64 = arith.cmpi sge, %53, %63 : vector<1x256xi32>
    %c14_i32 = arith.constant 14 : i32
    %65 = vector.broadcast %c14_i32 : i32 to vector<1x256xi32>
    %66 = arith.cmpi sle, %55, %65 : vector<1x256xi32>
    %67 = arith.andi %64, %66 : vector<1x256xi1>
    %c1_i32_15 = arith.constant 1 : i32
    %68 = vector.broadcast %c1_i32_15 : i32 to vector<1x256xi32>
    %69 = arith.cmpi sge, %55, %68 : vector<1x256xi32>
    %c14_i32_16 = arith.constant 14 : i32
    %70 = vector.broadcast %c14_i32_16 : i32 to vector<1x256xi32>
    %71 = arith.cmpi sle, %55, %70 : vector<1x256xi32>
    %c240_i32 = arith.constant 240 : i32
    %72 = vector.broadcast %c240_i32 : i32 to vector<1x256xi32>
    %73 = arith.cmpi slt, %53, %72 : vector<1x256xi32>
    %c1_i32_17 = arith.constant 1 : i32
    %74 = vector.broadcast %c1_i32_17 : i32 to vector<1x256xi32>
    %75 = arith.cmpi sge, %55, %74 : vector<1x256xi32>
    %76 = arith.andi %73, %75 : vector<1x256xi1>
    %c240_i32_18 = arith.constant 240 : i32
    %77 = vector.broadcast %c240_i32_18 : i32 to vector<1x256xi32>
    %78 = arith.cmpi slt, %53, %77 : vector<1x256xi32>
    %c240_i32_19 = arith.constant 240 : i32
    %79 = vector.broadcast %c240_i32_19 : i32 to vector<1x256xi32>
    %80 = arith.cmpi slt, %53, %79 : vector<1x256xi32>
    %c14_i32_20 = arith.constant 14 : i32
    %81 = vector.broadcast %c14_i32_20 : i32 to vector<1x256xi32>
    %82 = arith.cmpi sle, %55, %81 : vector<1x256xi32>
    %83 = arith.andi %80, %82 : vector<1x256xi1>
    %c0_21 = arith.constant 0 : index
    %c0_22 = arith.constant 0 : index
    %c0_23 = arith.constant 0 : index
    %84 = vector.load %arg2[%c0_21, %c0_22, %c0_23] : memref<8x8x1xf32, #tpu.memory_space<vmem>>, vector<1x8x1xf32>
    %85 = vector.shape_cast %84 : vector<1x8x1xf32> to vector<8x1xf32>
    %c1 = arith.constant 1 : index
    %c0_24 = arith.constant 0 : index
    %c0_25 = arith.constant 0 : index
    %86 = vector.load %arg2[%c1, %c0_24, %c0_25] : memref<8x8x1xf32, #tpu.memory_space<vmem>>, vector<1x8x1xf32>
    %87 = vector.shape_cast %86 : vector<1x8x1xf32> to vector<8x1xf32>
    %c2 = arith.constant 2 : index
    %c0_26 = arith.constant 0 : index
    %c0_27 = arith.constant 0 : index
    %88 = vector.load %arg2[%c2, %c0_26, %c0_27] : memref<8x8x1xf32, #tpu.memory_space<vmem>>, vector<1x8x1xf32>
    %89 = vector.shape_cast %88 : vector<1x8x1xf32> to vector<8x1xf32>
    %c3 = arith.constant 3 : index
    %c0_28 = arith.constant 0 : index
    %c0_29 = arith.constant 0 : index
    %90 = vector.load %arg2[%c3, %c0_28, %c0_29] : memref<8x8x1xf32, #tpu.memory_space<vmem>>, vector<1x8x1xf32>
    %91 = vector.shape_cast %90 : vector<1x8x1xf32> to vector<8x1xf32>
    %cst = arith.constant dense<0.000000e+00> : vector<8x256xf32>
    %92 = tpu.matmul %52, %1, %cst {dimension_numbers = #tpu.dot_dimension_numbers<[1], [0], [0], [1], [0, 0, 1, 1], [], []>, precision = #tpu.contract_precision<fp32>} : vector<8x8xf32>, vector<8x256xf32>, vector<8x256xf32> -> vector<8x256xf32>
    %cst_30 = arith.constant dense<0.000000e+00> : vector<8xf32>
    %93 = vector.multi_reduction <add>, %92, %cst_30 [1] : vector<8x256xf32> to vector<8xf32>
    %94 = vector.shape_cast %93 : vector<8xf32> to vector<8x1xf32>
    %cst_31 = arith.constant 0.001953125 : f32
    %95 = vector.broadcast %cst_31 : f32 to vector<8x1xf32>
    %96 = arith.mulf %94, %95 : vector<8x1xf32>
    %97 = vector.broadcast %96 : vector<8x1xf32> to vector<8x256xf32>
    %98 = arith.subf %1, %97 : vector<8x256xf32>
    %99 = arith.mulf %98, %98 : vector<8x256xf32>
    %cst_32 = arith.constant dense<0.000000e+00> : vector<8x256xf32>
    %100 = tpu.matmul %52, %99, %cst_32 {dimension_numbers = #tpu.dot_dimension_numbers<[1], [0], [0], [1], [0, 0, 1, 1], [], []>, precision = #tpu.contract_precision<fp32>} : vector<8x8xf32>, vector<8x256xf32>, vector<8x256xf32> -> vector<8x256xf32>
    %cst_33 = arith.constant dense<0.000000e+00> : vector<8xf32>
    %101 = vector.multi_reduction <add>, %100, %cst_33 [1] : vector<8x256xf32> to vector<8xf32>
    %102 = vector.shape_cast %101 : vector<8xf32> to vector<8x1xf32>
    %cst_34 = arith.constant 0.001953125 : f32
    %103 = vector.broadcast %cst_34 : f32 to vector<8x1xf32>
    %104 = arith.mulf %102, %103 : vector<8x1xf32>
    %cst_35 = arith.constant 9.99999997E-7 : f32
    %105 = vector.broadcast %cst_35 : f32 to vector<8x1xf32>
    %106 = arith.addf %104, %105 : vector<8x1xf32>
    %107 = math.rsqrt %106 : vector<8x1xf32>
    %108 = vector.broadcast %107 : vector<8x1xf32> to vector<8x256xf32>
    %109 = arith.mulf %98, %108 : vector<8x256xf32>
    %110 = vector.broadcast %85 : vector<8x1xf32> to vector<8x256xf32>
    %111 = arith.mulf %109, %110 : vector<8x256xf32>
    %112 = vector.broadcast %87 : vector<8x1xf32> to vector<8x256xf32>
    %113 = arith.addf %111, %112 : vector<8x256xf32>
    %114 = arith.negf %113 : vector<8x256xf32>
    %115 = math.exp %114 : vector<8x256xf32>
    %cst_36 = arith.constant 1.000000e+00 : f32
    %116 = vector.broadcast %cst_36 : f32 to vector<8x256xf32>
    %117 = arith.addf %116, %115 : vector<8x256xf32>
    %118 = arith.divf %116, %117 : vector<8x256xf32>
    %119 = arith.mulf %113, %118 : vector<8x256xf32>
    %c0_37 = arith.constant 0 : index
    %c0_38 = arith.constant 0 : index
    %c0_39 = arith.constant 0 : index
    %120 = vector.load %arg3[%c0_37, %c0_38, %c0_39] : memref<4x8x72xf32, #tpu.memory_space<vmem>>, vector<1x8x72xf32>
    %121 = vector.shape_cast %120 : vector<1x8x72xf32> to vector<8x72xf32>
    %c0_40 = arith.constant 0 : index
    %c0_41 = arith.constant 0 : index
    %c0_42 = arith.constant 0 : index
    %122 = vector.load %arg4[%c0_40, %c0_41, %c0_42] : memref<4x8x1xf32, #tpu.memory_space<vmem>>, vector<1x8x1xf32>
    %123 = vector.shape_cast %122 : vector<1x8x1xf32> to vector<8x1xf32>
    %c17_i32 = arith.constant 17 : i32
    %124 = tpu.dynamic_rotate %119 by %c17_i32 dim 1 : vector<8x256xf32>, i32 -> vector<8x256xf32>
    %cst_43 = arith.constant 0.000000e+00 : f32
    %125 = vector.shape_cast %60 : vector<1x256xi1> to vector<1x256xi1>
    %126 = vector.broadcast %125 : vector<1x256xi1> to vector<8x256xi1>
    %127 = vector.broadcast %cst_43 : f32 to vector<8x256xf32>
    %128 = arith.select %126, %124, %127 : vector<8x256xi1>, vector<8x256xf32>
    %c16_i32_44 = arith.constant 16 : i32
    %129 = tpu.dynamic_rotate %119 by %c16_i32_44 dim 1 : vector<8x256xf32>, i32 -> vector<8x256xf32>
    %cst_45 = arith.constant 0.000000e+00 : f32
    %130 = vector.shape_cast %62 : vector<1x256xi1> to vector<1x256xi1>
    %131 = vector.broadcast %130 : vector<1x256xi1> to vector<8x256xi1>
    %132 = vector.broadcast %cst_45 : f32 to vector<8x256xf32>
    %133 = arith.select %131, %129, %132 : vector<8x256xi1>, vector<8x256xf32>
    %c15_i32_46 = arith.constant 15 : i32
    %134 = tpu.dynamic_rotate %119 by %c15_i32_46 dim 1 : vector<8x256xf32>, i32 -> vector<8x256xf32>
    %cst_47 = arith.constant 0.000000e+00 : f32
    %135 = vector.shape_cast %67 : vector<1x256xi1> to vector<1x256xi1>
    %136 = vector.broadcast %135 : vector<1x256xi1> to vector<8x256xi1>
    %137 = vector.broadcast %cst_47 : f32 to vector<8x256xf32>
    %138 = arith.select %136, %134, %137 : vector<8x256xi1>, vector<8x256xf32>
    %c1_i32_48 = arith.constant 1 : i32
    %139 = tpu.dynamic_rotate %119 by %c1_i32_48 dim 1 : vector<8x256xf32>, i32 -> vector<8x256xf32>
    %cst_49 = arith.constant 0.000000e+00 : f32
    %140 = vector.shape_cast %69 : vector<1x256xi1> to vector<1x256xi1>
    %141 = vector.broadcast %140 : vector<1x256xi1> to vector<8x256xi1>
    %142 = vector.broadcast %cst_49 : f32 to vector<8x256xf32>
    %143 = arith.select %141, %139, %142 : vector<8x256xi1>, vector<8x256xf32>
    %c255_i32 = arith.constant 255 : i32
    %144 = tpu.dynamic_rotate %119 by %c255_i32 dim 1 : vector<8x256xf32>, i32 -> vector<8x256xf32>
    %cst_50 = arith.constant 0.000000e+00 : f32
    %145 = vector.shape_cast %71 : vector<1x256xi1> to vector<1x256xi1>
    %146 = vector.broadcast %145 : vector<1x256xi1> to vector<8x256xi1>
    %147 = vector.broadcast %cst_50 : f32 to vector<8x256xf32>
    %148 = arith.select %146, %144, %147 : vector<8x256xi1>, vector<8x256xf32>
    %c241_i32 = arith.constant 241 : i32
    %149 = tpu.dynamic_rotate %119 by %c241_i32 dim 1 : vector<8x256xf32>, i32 -> vector<8x256xf32>
    %cst_51 = arith.constant 0.000000e+00 : f32
    %150 = vector.shape_cast %76 : vector<1x256xi1> to vector<1x256xi1>
    %151 = vector.broadcast %150 : vector<1x256xi1> to vector<8x256xi1>
    %152 = vector.broadcast %cst_51 : f32 to vector<8x256xf32>
    %153 = arith.select %151, %149, %152 : vector<8x256xi1>, vector<8x256xf32>
    %c240_i32_52 = arith.constant 240 : i32
    %154 = tpu.dynamic_rotate %119 by %c240_i32_52 dim 1 : vector<8x256xf32>, i32 -> vector<8x256xf32>
    %cst_53 = arith.constant 0.000000e+00 : f32
    %155 = vector.shape_cast %78 : vector<1x256xi1> to vector<1x256xi1>
    %156 = vector.broadcast %155 : vector<1x256xi1> to vector<8x256xi1>
    %157 = vector.broadcast %cst_53 : f32 to vector<8x256xf32>
    %158 = arith.select %156, %154, %157 : vector<8x256xi1>, vector<8x256xf32>
    %c239_i32 = arith.constant 239 : i32
    %159 = tpu.dynamic_rotate %119 by %c239_i32 dim 1 : vector<8x256xf32>, i32 -> vector<8x256xf32>
    %cst_54 = arith.constant 0.000000e+00 : f32
    %160 = vector.shape_cast %83 : vector<1x256xi1> to vector<1x256xi1>
    %161 = vector.broadcast %160 : vector<1x256xi1> to vector<8x256xi1>
    %162 = vector.broadcast %cst_54 : f32 to vector<8x256xf32>
    %163 = arith.select %161, %159, %162 : vector<8x256xi1>, vector<8x256xf32>
    %164 = tpu.concatenate %128, %133, %138, %143, %119, %148, %153, %158, %163 in 0 : vector<8x256xf32>, vector<8x256xf32>, vector<8x256xf32>, vector<8x256xf32>, vector<8x256xf32>, vector<8x256xf32>, vector<8x256xf32>, vector<8x256xf32>, vector<8x256xf32> -> vector<72x256xf32>
    %165 = arith.truncf %121 : vector<8x72xf32> to vector<8x72xbf16>
    %166 = arith.truncf %164 : vector<72x256xf32> to vector<72x256xbf16>
    %cst_55 = arith.constant dense<0.000000e+00> : vector<8x256xf32>
    %167 = tpu.matmul %165, %166, %cst_55 {dimension_numbers = #tpu.dot_dimension_numbers<[1], [0], [0], [1], [0, 0, 1, 1], [], []>} : vector<8x72xbf16>, vector<72x256xbf16>, vector<8x256xf32> -> vector<8x256xf32>
    %168 = vector.broadcast %123 : vector<8x1xf32> to vector<8x256xf32>
    %169 = arith.addf %167, %168 : vector<8x256xf32>
    %cst_56 = arith.constant dense<0.000000e+00> : vector<8x256xf32>
    %170 = tpu.matmul %52, %169, %cst_56 {dimension_numbers = #tpu.dot_dimension_numbers<[1], [0], [0], [1], [0, 0, 1, 1], [], []>, precision = #tpu.contract_precision<fp32>} : vector<8x8xf32>, vector<8x256xf32>, vector<8x256xf32> -> vector<8x256xf32>
    %cst_57 = arith.constant dense<0.000000e+00> : vector<8xf32>
    %171 = vector.multi_reduction <add>, %170, %cst_57 [1] : vector<8x256xf32> to vector<8xf32>
    %172 = vector.shape_cast %171 : vector<8xf32> to vector<8x1xf32>
    %cst_58 = arith.constant 0.001953125 : f32
    %173 = vector.broadcast %cst_58 : f32 to vector<8x1xf32>
    %174 = arith.mulf %172, %173 : vector<8x1xf32>
    %175 = vector.broadcast %174 : vector<8x1xf32> to vector<8x256xf32>
    %176 = arith.subf %169, %175 : vector<8x256xf32>
    %177 = arith.mulf %176, %176 : vector<8x256xf32>
    %cst_59 = arith.constant dense<0.000000e+00> : vector<8x256xf32>
    %178 = tpu.matmul %52, %177, %cst_59 {dimension_numbers = #tpu.dot_dimension_numbers<[1], [0], [0], [1], [0, 0, 1, 1], [], []>, precision = #tpu.contract_precision<fp32>} : vector<8x8xf32>, vector<8x256xf32>, vector<8x256xf32> -> vector<8x256xf32>
    %cst_60 = arith.constant dense<0.000000e+00> : vector<8xf32>
    %179 = vector.multi_reduction <add>, %178, %cst_60 [1] : vector<8x256xf32> to vector<8xf32>
    %180 = vector.shape_cast %179 : vector<8xf32> to vector<8x1xf32>
    %cst_61 = arith.constant 0.001953125 : f32
    %181 = vector.broadcast %cst_61 : f32 to vector<8x1xf32>
    %182 = arith.mulf %180, %181 : vector<8x1xf32>
    %cst_62 = arith.constant 9.99999997E-7 : f32
    %183 = vector.broadcast %cst_62 : f32 to vector<8x1xf32>
    %184 = arith.addf %182, %183 : vector<8x1xf32>
    %185 = math.rsqrt %184 : vector<8x1xf32>
    %186 = vector.broadcast %185 : vector<8x1xf32> to vector<8x256xf32>
    %187 = arith.mulf %176, %186 : vector<8x256xf32>
    %188 = vector.broadcast %89 : vector<8x1xf32> to vector<8x256xf32>
    %189 = arith.mulf %187, %188 : vector<8x256xf32>
    %190 = vector.broadcast %91 : vector<8x1xf32> to vector<8x256xf32>
    %191 = arith.addf %189, %190 : vector<8x256xf32>
    %192 = arith.negf %191 : vector<8x256xf32>
    %193 = math.exp %192 : vector<8x256xf32>
    %cst_63 = arith.constant 1.000000e+00 : f32
    %194 = vector.broadcast %cst_63 : f32 to vector<8x256xf32>
    %195 = arith.addf %194, %193 : vector<8x256xf32>
    %196 = arith.divf %194, %195 : vector<8x256xf32>
    %197 = arith.mulf %191, %196 : vector<8x256xf32>
    %c1_64 = arith.constant 1 : index
    %c0_65 = arith.constant 0 : index
    %c0_66 = arith.constant 0 : index
    %198 = vector.load %arg3[%c1_64, %c0_65, %c0_66] : memref<4x8x72xf32, #tpu.memory_space<vmem>>, vector<1x8x72xf32>
    %199 = vector.shape_cast %198 : vector<1x8x72xf32> to vector<8x72xf32>
    %c1_67 = arith.constant 1 : index
    %c0_68 = arith.constant 0 : index
    %c0_69 = arith.constant 0 : index
    %200 = vector.load %arg4[%c1_67, %c0_68, %c0_69] : memref<4x8x1xf32, #tpu.memory_space<vmem>>, vector<1x8x1xf32>
    %201 = vector.shape_cast %200 : vector<1x8x1xf32> to vector<8x1xf32>
    %c17_i32_70 = arith.constant 17 : i32
    %202 = tpu.dynamic_rotate %197 by %c17_i32_70 dim 1 : vector<8x256xf32>, i32 -> vector<8x256xf32>
    %cst_71 = arith.constant 0.000000e+00 : f32
    %203 = vector.shape_cast %60 : vector<1x256xi1> to vector<1x256xi1>
    %204 = vector.broadcast %203 : vector<1x256xi1> to vector<8x256xi1>
    %205 = vector.broadcast %cst_71 : f32 to vector<8x256xf32>
    %206 = arith.select %204, %202, %205 : vector<8x256xi1>, vector<8x256xf32>
    %c16_i32_72 = arith.constant 16 : i32
    %207 = tpu.dynamic_rotate %197 by %c16_i32_72 dim 1 : vector<8x256xf32>, i32 -> vector<8x256xf32>
    %cst_73 = arith.constant 0.000000e+00 : f32
    %208 = vector.shape_cast %62 : vector<1x256xi1> to vector<1x256xi1>
    %209 = vector.broadcast %208 : vector<1x256xi1> to vector<8x256xi1>
    %210 = vector.broadcast %cst_73 : f32 to vector<8x256xf32>
    %211 = arith.select %209, %207, %210 : vector<8x256xi1>, vector<8x256xf32>
    %c15_i32_74 = arith.constant 15 : i32
    %212 = tpu.dynamic_rotate %197 by %c15_i32_74 dim 1 : vector<8x256xf32>, i32 -> vector<8x256xf32>
    %cst_75 = arith.constant 0.000000e+00 : f32
    %213 = vector.shape_cast %67 : vector<1x256xi1> to vector<1x256xi1>
    %214 = vector.broadcast %213 : vector<1x256xi1> to vector<8x256xi1>
    %215 = vector.broadcast %cst_75 : f32 to vector<8x256xf32>
    %216 = arith.select %214, %212, %215 : vector<8x256xi1>, vector<8x256xf32>
    %c1_i32_76 = arith.constant 1 : i32
    %217 = tpu.dynamic_rotate %197 by %c1_i32_76 dim 1 : vector<8x256xf32>, i32 -> vector<8x256xf32>
    %cst_77 = arith.constant 0.000000e+00 : f32
    %218 = vector.shape_cast %69 : vector<1x256xi1> to vector<1x256xi1>
    %219 = vector.broadcast %218 : vector<1x256xi1> to vector<8x256xi1>
    %220 = vector.broadcast %cst_77 : f32 to vector<8x256xf32>
    %221 = arith.select %219, %217, %220 : vector<8x256xi1>, vector<8x256xf32>
    %c255_i32_78 = arith.constant 255 : i32
    %222 = tpu.dynamic_rotate %197 by %c255_i32_78 dim 1 : vector<8x256xf32>, i32 -> vector<8x256xf32>
    %cst_79 = arith.constant 0.000000e+00 : f32
    %223 = vector.shape_cast %71 : vector<1x256xi1> to vector<1x256xi1>
    %224 = vector.broadcast %223 : vector<1x256xi1> to vector<8x256xi1>
    %225 = vector.broadcast %cst_79 : f32 to vector<8x256xf32>
    %226 = arith.select %224, %222, %225 : vector<8x256xi1>, vector<8x256xf32>
    %c241_i32_80 = arith.constant 241 : i32
    %227 = tpu.dynamic_rotate %197 by %c241_i32_80 dim 1 : vector<8x256xf32>, i32 -> vector<8x256xf32>
    %cst_81 = arith.constant 0.000000e+00 : f32
    %228 = vector.shape_cast %76 : vector<1x256xi1> to vector<1x256xi1>
    %229 = vector.broadcast %228 : vector<1x256xi1> to vector<8x256xi1>
    %230 = vector.broadcast %cst_81 : f32 to vector<8x256xf32>
    %231 = arith.select %229, %227, %230 : vector<8x256xi1>, vector<8x256xf32>
    %c240_i32_82 = arith.constant 240 : i32
    %232 = tpu.dynamic_rotate %197 by %c240_i32_82 dim 1 : vector<8x256xf32>, i32 -> vector<8x256xf32>
    %cst_83 = arith.constant 0.000000e+00 : f32
    %233 = vector.shape_cast %78 : vector<1x256xi1> to vector<1x256xi1>
    %234 = vector.broadcast %233 : vector<1x256xi1> to vector<8x256xi1>
    %235 = vector.broadcast %cst_83 : f32 to vector<8x256xf32>
    %236 = arith.select %234, %232, %235 : vector<8x256xi1>, vector<8x256xf32>
    %c239_i32_84 = arith.constant 239 : i32
    %237 = tpu.dynamic_rotate %197 by %c239_i32_84 dim 1 : vector<8x256xf32>, i32 -> vector<8x256xf32>
    %cst_85 = arith.constant 0.000000e+00 : f32
    %238 = vector.shape_cast %83 : vector<1x256xi1> to vector<1x256xi1>
    %239 = vector.broadcast %238 : vector<1x256xi1> to vector<8x256xi1>
    %240 = vector.broadcast %cst_85 : f32 to vector<8x256xf32>
    %241 = arith.select %239, %237, %240 : vector<8x256xi1>, vector<8x256xf32>
    %242 = tpu.concatenate %206, %211, %216, %221, %197, %226, %231, %236, %241 in 0 : vector<8x256xf32>, vector<8x256xf32>, vector<8x256xf32>, vector<8x256xf32>, vector<8x256xf32>, vector<8x256xf32>, vector<8x256xf32>, vector<8x256xf32>, vector<8x256xf32> -> vector<72x256xf32>
    %243 = arith.truncf %199 : vector<8x72xf32> to vector<8x72xbf16>
    %244 = arith.truncf %242 : vector<72x256xf32> to vector<72x256xbf16>
    %cst_86 = arith.constant dense<0.000000e+00> : vector<8x256xf32>
    %245 = tpu.matmul %243, %244, %cst_86 {dimension_numbers = #tpu.dot_dimension_numbers<[1], [0], [0], [1], [0, 0, 1, 1], [], []>} : vector<8x72xbf16>, vector<72x256xbf16>, vector<8x256xf32> -> vector<8x256xf32>
    %246 = vector.broadcast %201 : vector<8x1xf32> to vector<8x256xf32>
    %247 = arith.addf %245, %246 : vector<8x256xf32>
    %248 = arith.addf %1, %247 : vector<8x256xf32>
    %c4 = arith.constant 4 : index
    %c0_87 = arith.constant 0 : index
    %c0_88 = arith.constant 0 : index
    %249 = vector.load %arg2[%c4, %c0_87, %c0_88] : memref<8x8x1xf32, #tpu.memory_space<vmem>>, vector<1x8x1xf32>
    %250 = vector.shape_cast %249 : vector<1x8x1xf32> to vector<8x1xf32>
    %c5 = arith.constant 5 : index
    %c0_89 = arith.constant 0 : index
    %c0_90 = arith.constant 0 : index
    %251 = vector.load %arg2[%c5, %c0_89, %c0_90] : memref<8x8x1xf32, #tpu.memory_space<vmem>>, vector<1x8x1xf32>
    %252 = vector.shape_cast %251 : vector<1x8x1xf32> to vector<8x1xf32>
    %c6 = arith.constant 6 : index
    %c0_91 = arith.constant 0 : index
    %c0_92 = arith.constant 0 : index
    %253 = vector.load %arg2[%c6, %c0_91, %c0_92] : memref<8x8x1xf32, #tpu.memory_space<vmem>>, vector<1x8x1xf32>
    %254 = vector.shape_cast %253 : vector<1x8x1xf32> to vector<8x1xf32>
    %c7 = arith.constant 7 : index
    %c0_93 = arith.constant 0 : index
    %c0_94 = arith.constant 0 : index
    %255 = vector.load %arg2[%c7, %c0_93, %c0_94] : memref<8x8x1xf32, #tpu.memory_space<vmem>>, vector<1x8x1xf32>
    %256 = vector.shape_cast %255 : vector<1x8x1xf32> to vector<8x1xf32>
    %cst_95 = arith.constant dense<0.000000e+00> : vector<8x256xf32>
    %257 = tpu.matmul %52, %248, %cst_95 {dimension_numbers = #tpu.dot_dimension_numbers<[1], [0], [0], [1], [0, 0, 1, 1], [], []>, precision = #tpu.contract_precision<fp32>} : vector<8x8xf32>, vector<8x256xf32>, vector<8x256xf32> -> vector<8x256xf32>
    %cst_96 = arith.constant dense<0.000000e+00> : vector<8xf32>
    %258 = vector.multi_reduction <add>, %257, %cst_96 [1] : vector<8x256xf32> to vector<8xf32>
    %259 = vector.shape_cast %258 : vector<8xf32> to vector<8x1xf32>
    %cst_97 = arith.constant 0.001953125 : f32
    %260 = vector.broadcast %cst_97 : f32 to vector<8x1xf32>
    %261 = arith.mulf %259, %260 : vector<8x1xf32>
    %262 = vector.broadcast %261 : vector<8x1xf32> to vector<8x256xf32>
    %263 = arith.subf %248, %262 : vector<8x256xf32>
    %264 = arith.mulf %263, %263 : vector<8x256xf32>
    %cst_98 = arith.constant dense<0.000000e+00> : vector<8x256xf32>
    %265 = tpu.matmul %52, %264, %cst_98 {dimension_numbers = #tpu.dot_dimension_numbers<[1], [0], [0], [1], [0, 0, 1, 1], [], []>, precision = #tpu.contract_precision<fp32>} : vector<8x8xf32>, vector<8x256xf32>, vector<8x256xf32> -> vector<8x256xf32>
    %cst_99 = arith.constant dense<0.000000e+00> : vector<8xf32>
    %266 = vector.multi_reduction <add>, %265, %cst_99 [1] : vector<8x256xf32> to vector<8xf32>
    %267 = vector.shape_cast %266 : vector<8xf32> to vector<8x1xf32>
    %cst_100 = arith.constant 0.001953125 : f32
    %268 = vector.broadcast %cst_100 : f32 to vector<8x1xf32>
    %269 = arith.mulf %267, %268 : vector<8x1xf32>
    %cst_101 = arith.constant 9.99999997E-7 : f32
    %270 = vector.broadcast %cst_101 : f32 to vector<8x1xf32>
    %271 = arith.addf %269, %270 : vector<8x1xf32>
    %272 = math.rsqrt %271 : vector<8x1xf32>
    %273 = vector.broadcast %272 : vector<8x1xf32> to vector<8x256xf32>
    %274 = arith.mulf %263, %273 : vector<8x256xf32>
    %275 = vector.broadcast %250 : vector<8x1xf32> to vector<8x256xf32>
    %276 = arith.mulf %274, %275 : vector<8x256xf32>
    %277 = vector.broadcast %252 : vector<8x1xf32> to vector<8x256xf32>
    %278 = arith.addf %276, %277 : vector<8x256xf32>
    %279 = arith.negf %278 : vector<8x256xf32>
    %280 = math.exp %279 : vector<8x256xf32>
    %cst_102 = arith.constant 1.000000e+00 : f32
    %281 = vector.broadcast %cst_102 : f32 to vector<8x256xf32>
    %282 = arith.addf %281, %280 : vector<8x256xf32>
    %283 = arith.divf %281, %282 : vector<8x256xf32>
    %284 = arith.mulf %278, %283 : vector<8x256xf32>
    %c2_103 = arith.constant 2 : index
    %c0_104 = arith.constant 0 : index
    %c0_105 = arith.constant 0 : index
    %285 = vector.load %arg3[%c2_103, %c0_104, %c0_105] : memref<4x8x72xf32, #tpu.memory_space<vmem>>, vector<1x8x72xf32>
    %286 = vector.shape_cast %285 : vector<1x8x72xf32> to vector<8x72xf32>
    %c2_106 = arith.constant 2 : index
    %c0_107 = arith.constant 0 : index
    %c0_108 = arith.constant 0 : index
    %287 = vector.load %arg4[%c2_106, %c0_107, %c0_108] : memref<4x8x1xf32, #tpu.memory_space<vmem>>, vector<1x8x1xf32>
    %288 = vector.shape_cast %287 : vector<1x8x1xf32> to vector<8x1xf32>
    %c17_i32_109 = arith.constant 17 : i32
    %289 = tpu.dynamic_rotate %284 by %c17_i32_109 dim 1 : vector<8x256xf32>, i32 -> vector<8x256xf32>
    %cst_110 = arith.constant 0.000000e+00 : f32
    %290 = vector.shape_cast %60 : vector<1x256xi1> to vector<1x256xi1>
    %291 = vector.broadcast %290 : vector<1x256xi1> to vector<8x256xi1>
    %292 = vector.broadcast %cst_110 : f32 to vector<8x256xf32>
    %293 = arith.select %291, %289, %292 : vector<8x256xi1>, vector<8x256xf32>
    %c16_i32_111 = arith.constant 16 : i32
    %294 = tpu.dynamic_rotate %284 by %c16_i32_111 dim 1 : vector<8x256xf32>, i32 -> vector<8x256xf32>
    %cst_112 = arith.constant 0.000000e+00 : f32
    %295 = vector.shape_cast %62 : vector<1x256xi1> to vector<1x256xi1>
    %296 = vector.broadcast %295 : vector<1x256xi1> to vector<8x256xi1>
    %297 = vector.broadcast %cst_112 : f32 to vector<8x256xf32>
    %298 = arith.select %296, %294, %297 : vector<8x256xi1>, vector<8x256xf32>
    %c15_i32_113 = arith.constant 15 : i32
    %299 = tpu.dynamic_rotate %284 by %c15_i32_113 dim 1 : vector<8x256xf32>, i32 -> vector<8x256xf32>
    %cst_114 = arith.constant 0.000000e+00 : f32
    %300 = vector.shape_cast %67 : vector<1x256xi1> to vector<1x256xi1>
    %301 = vector.broadcast %300 : vector<1x256xi1> to vector<8x256xi1>
    %302 = vector.broadcast %cst_114 : f32 to vector<8x256xf32>
    %303 = arith.select %301, %299, %302 : vector<8x256xi1>, vector<8x256xf32>
    %c1_i32_115 = arith.constant 1 : i32
    %304 = tpu.dynamic_rotate %284 by %c1_i32_115 dim 1 : vector<8x256xf32>, i32 -> vector<8x256xf32>
    %cst_116 = arith.constant 0.000000e+00 : f32
    %305 = vector.shape_cast %69 : vector<1x256xi1> to vector<1x256xi1>
    %306 = vector.broadcast %305 : vector<1x256xi1> to vector<8x256xi1>
    %307 = vector.broadcast %cst_116 : f32 to vector<8x256xf32>
    %308 = arith.select %306, %304, %307 : vector<8x256xi1>, vector<8x256xf32>
    %c255_i32_117 = arith.constant 255 : i32
    %309 = tpu.dynamic_rotate %284 by %c255_i32_117 dim 1 : vector<8x256xf32>, i32 -> vector<8x256xf32>
    %cst_118 = arith.constant 0.000000e+00 : f32
    %310 = vector.shape_cast %71 : vector<1x256xi1> to vector<1x256xi1>
    %311 = vector.broadcast %310 : vector<1x256xi1> to vector<8x256xi1>
    %312 = vector.broadcast %cst_118 : f32 to vector<8x256xf32>
    %313 = arith.select %311, %309, %312 : vector<8x256xi1>, vector<8x256xf32>
    %c241_i32_119 = arith.constant 241 : i32
    %314 = tpu.dynamic_rotate %284 by %c241_i32_119 dim 1 : vector<8x256xf32>, i32 -> vector<8x256xf32>
    %cst_120 = arith.constant 0.000000e+00 : f32
    %315 = vector.shape_cast %76 : vector<1x256xi1> to vector<1x256xi1>
    %316 = vector.broadcast %315 : vector<1x256xi1> to vector<8x256xi1>
    %317 = vector.broadcast %cst_120 : f32 to vector<8x256xf32>
    %318 = arith.select %316, %314, %317 : vector<8x256xi1>, vector<8x256xf32>
    %c240_i32_121 = arith.constant 240 : i32
    %319 = tpu.dynamic_rotate %284 by %c240_i32_121 dim 1 : vector<8x256xf32>, i32 -> vector<8x256xf32>
    %cst_122 = arith.constant 0.000000e+00 : f32
    %320 = vector.shape_cast %78 : vector<1x256xi1> to vector<1x256xi1>
    %321 = vector.broadcast %320 : vector<1x256xi1> to vector<8x256xi1>
    %322 = vector.broadcast %cst_122 : f32 to vector<8x256xf32>
    %323 = arith.select %321, %319, %322 : vector<8x256xi1>, vector<8x256xf32>
    %c239_i32_123 = arith.constant 239 : i32
    %324 = tpu.dynamic_rotate %284 by %c239_i32_123 dim 1 : vector<8x256xf32>, i32 -> vector<8x256xf32>
    %cst_124 = arith.constant 0.000000e+00 : f32
    %325 = vector.shape_cast %83 : vector<1x256xi1> to vector<1x256xi1>
    %326 = vector.broadcast %325 : vector<1x256xi1> to vector<8x256xi1>
    %327 = vector.broadcast %cst_124 : f32 to vector<8x256xf32>
    %328 = arith.select %326, %324, %327 : vector<8x256xi1>, vector<8x256xf32>
    %329 = tpu.concatenate %293, %298, %303, %308, %284, %313, %318, %323, %328 in 0 : vector<8x256xf32>, vector<8x256xf32>, vector<8x256xf32>, vector<8x256xf32>, vector<8x256xf32>, vector<8x256xf32>, vector<8x256xf32>, vector<8x256xf32>, vector<8x256xf32> -> vector<72x256xf32>
    %330 = arith.truncf %286 : vector<8x72xf32> to vector<8x72xbf16>
    %331 = arith.truncf %329 : vector<72x256xf32> to vector<72x256xbf16>
    %cst_125 = arith.constant dense<0.000000e+00> : vector<8x256xf32>
    %332 = tpu.matmul %330, %331, %cst_125 {dimension_numbers = #tpu.dot_dimension_numbers<[1], [0], [0], [1], [0, 0, 1, 1], [], []>} : vector<8x72xbf16>, vector<72x256xbf16>, vector<8x256xf32> -> vector<8x256xf32>
    %333 = vector.broadcast %288 : vector<8x1xf32> to vector<8x256xf32>
    %334 = arith.addf %332, %333 : vector<8x256xf32>
    %cst_126 = arith.constant dense<0.000000e+00> : vector<8x256xf32>
    %335 = tpu.matmul %52, %334, %cst_126 {dimension_numbers = #tpu.dot_dimension_numbers<[1], [0], [0], [1], [0, 0, 1, 1], [], []>, precision = #tpu.contract_precision<fp32>} : vector<8x8xf32>, vector<8x256xf32>, vector<8x256xf32> -> vector<8x256xf32>
    %cst_127 = arith.constant dense<0.000000e+00> : vector<8xf32>
    %336 = vector.multi_reduction <add>, %335, %cst_127 [1] : vector<8x256xf32> to vector<8xf32>
    %337 = vector.shape_cast %336 : vector<8xf32> to vector<8x1xf32>
    %cst_128 = arith.constant 0.001953125 : f32
    %338 = vector.broadcast %cst_128 : f32 to vector<8x1xf32>
    %339 = arith.mulf %337, %338 : vector<8x1xf32>
    %340 = vector.broadcast %339 : vector<8x1xf32> to vector<8x256xf32>
    %341 = arith.subf %334, %340 : vector<8x256xf32>
    %342 = arith.mulf %341, %341 : vector<8x256xf32>
    %cst_129 = arith.constant dense<0.000000e+00> : vector<8x256xf32>
    %343 = tpu.matmul %52, %342, %cst_129 {dimension_numbers = #tpu.dot_dimension_numbers<[1], [0], [0], [1], [0, 0, 1, 1], [], []>, precision = #tpu.contract_precision<fp32>} : vector<8x8xf32>, vector<8x256xf32>, vector<8x256xf32> -> vector<8x256xf32>
    %cst_130 = arith.constant dense<0.000000e+00> : vector<8xf32>
    %344 = vector.multi_reduction <add>, %343, %cst_130 [1] : vector<8x256xf32> to vector<8xf32>
    %345 = vector.shape_cast %344 : vector<8xf32> to vector<8x1xf32>
    %cst_131 = arith.constant 0.001953125 : f32
    %346 = vector.broadcast %cst_131 : f32 to vector<8x1xf32>
    %347 = arith.mulf %345, %346 : vector<8x1xf32>
    %cst_132 = arith.constant 9.99999997E-7 : f32
    %348 = vector.broadcast %cst_132 : f32 to vector<8x1xf32>
    %349 = arith.addf %347, %348 : vector<8x1xf32>
    %350 = math.rsqrt %349 : vector<8x1xf32>
    %351 = vector.broadcast %350 : vector<8x1xf32> to vector<8x256xf32>
    %352 = arith.mulf %341, %351 : vector<8x256xf32>
    %353 = vector.broadcast %254 : vector<8x1xf32> to vector<8x256xf32>
    %354 = arith.mulf %352, %353 : vector<8x256xf32>
    %355 = vector.broadcast %256 : vector<8x1xf32> to vector<8x256xf32>
    %356 = arith.addf %354, %355 : vector<8x256xf32>
    %357 = arith.negf %356 : vector<8x256xf32>
    %358 = math.exp %357 : vector<8x256xf32>
    %cst_133 = arith.constant 1.000000e+00 : f32
    %359 = vector.broadcast %cst_133 : f32 to vector<8x256xf32>
    %360 = arith.addf %359, %358 : vector<8x256xf32>
    %361 = arith.divf %359, %360 : vector<8x256xf32>
    %362 = arith.mulf %356, %361 : vector<8x256xf32>
    %c3_134 = arith.constant 3 : index
    %c0_135 = arith.constant 0 : index
    %c0_136 = arith.constant 0 : index
    %363 = vector.load %arg3[%c3_134, %c0_135, %c0_136] : memref<4x8x72xf32, #tpu.memory_space<vmem>>, vector<1x8x72xf32>
    %364 = vector.shape_cast %363 : vector<1x8x72xf32> to vector<8x72xf32>
    %c3_137 = arith.constant 3 : index
    %c0_138 = arith.constant 0 : index
    %c0_139 = arith.constant 0 : index
    %365 = vector.load %arg4[%c3_137, %c0_138, %c0_139] : memref<4x8x1xf32, #tpu.memory_space<vmem>>, vector<1x8x1xf32>
    %366 = vector.shape_cast %365 : vector<1x8x1xf32> to vector<8x1xf32>
    %c17_i32_140 = arith.constant 17 : i32
    %367 = tpu.dynamic_rotate %362 by %c17_i32_140 dim 1 : vector<8x256xf32>, i32 -> vector<8x256xf32>
    %cst_141 = arith.constant 0.000000e+00 : f32
    %368 = vector.shape_cast %60 : vector<1x256xi1> to vector<1x256xi1>
    %369 = vector.broadcast %368 : vector<1x256xi1> to vector<8x256xi1>
    %370 = vector.broadcast %cst_141 : f32 to vector<8x256xf32>
    %371 = arith.select %369, %367, %370 : vector<8x256xi1>, vector<8x256xf32>
    %c16_i32_142 = arith.constant 16 : i32
    %372 = tpu.dynamic_rotate %362 by %c16_i32_142 dim 1 : vector<8x256xf32>, i32 -> vector<8x256xf32>
    %cst_143 = arith.constant 0.000000e+00 : f32
    %373 = vector.shape_cast %62 : vector<1x256xi1> to vector<1x256xi1>
    %374 = vector.broadcast %373 : vector<1x256xi1> to vector<8x256xi1>
    %375 = vector.broadcast %cst_143 : f32 to vector<8x256xf32>
    %376 = arith.select %374, %372, %375 : vector<8x256xi1>, vector<8x256xf32>
    %c15_i32_144 = arith.constant 15 : i32
    %377 = tpu.dynamic_rotate %362 by %c15_i32_144 dim 1 : vector<8x256xf32>, i32 -> vector<8x256xf32>
    %cst_145 = arith.constant 0.000000e+00 : f32
    %378 = vector.shape_cast %67 : vector<1x256xi1> to vector<1x256xi1>
    %379 = vector.broadcast %378 : vector<1x256xi1> to vector<8x256xi1>
    %380 = vector.broadcast %cst_145 : f32 to vector<8x256xf32>
    %381 = arith.select %379, %377, %380 : vector<8x256xi1>, vector<8x256xf32>
    %c1_i32_146 = arith.constant 1 : i32
    %382 = tpu.dynamic_rotate %362 by %c1_i32_146 dim 1 : vector<8x256xf32>, i32 -> vector<8x256xf32>
    %cst_147 = arith.constant 0.000000e+00 : f32
    %383 = vector.shape_cast %69 : vector<1x256xi1> to vector<1x256xi1>
    %384 = vector.broadcast %383 : vector<1x256xi1> to vector<8x256xi1>
    %385 = vector.broadcast %cst_147 : f32 to vector<8x256xf32>
    %386 = arith.select %384, %382, %385 : vector<8x256xi1>, vector<8x256xf32>
    %c255_i32_148 = arith.constant 255 : i32
    %387 = tpu.dynamic_rotate %362 by %c255_i32_148 dim 1 : vector<8x256xf32>, i32 -> vector<8x256xf32>
    %cst_149 = arith.constant 0.000000e+00 : f32
    %388 = vector.shape_cast %71 : vector<1x256xi1> to vector<1x256xi1>
    %389 = vector.broadcast %388 : vector<1x256xi1> to vector<8x256xi1>
    %390 = vector.broadcast %cst_149 : f32 to vector<8x256xf32>
    %391 = arith.select %389, %387, %390 : vector<8x256xi1>, vector<8x256xf32>
    %c241_i32_150 = arith.constant 241 : i32
    %392 = tpu.dynamic_rotate %362 by %c241_i32_150 dim 1 : vector<8x256xf32>, i32 -> vector<8x256xf32>
    %cst_151 = arith.constant 0.000000e+00 : f32
    %393 = vector.shape_cast %76 : vector<1x256xi1> to vector<1x256xi1>
    %394 = vector.broadcast %393 : vector<1x256xi1> to vector<8x256xi1>
    %395 = vector.broadcast %cst_151 : f32 to vector<8x256xf32>
    %396 = arith.select %394, %392, %395 : vector<8x256xi1>, vector<8x256xf32>
    %c240_i32_152 = arith.constant 240 : i32
    %397 = tpu.dynamic_rotate %362 by %c240_i32_152 dim 1 : vector<8x256xf32>, i32 -> vector<8x256xf32>
    %cst_153 = arith.constant 0.000000e+00 : f32
    %398 = vector.shape_cast %78 : vector<1x256xi1> to vector<1x256xi1>
    %399 = vector.broadcast %398 : vector<1x256xi1> to vector<8x256xi1>
    %400 = vector.broadcast %cst_153 : f32 to vector<8x256xf32>
    %401 = arith.select %399, %397, %400 : vector<8x256xi1>, vector<8x256xf32>
    %c239_i32_154 = arith.constant 239 : i32
    %402 = tpu.dynamic_rotate %362 by %c239_i32_154 dim 1 : vector<8x256xf32>, i32 -> vector<8x256xf32>
    %cst_155 = arith.constant 0.000000e+00 : f32
    %403 = vector.shape_cast %83 : vector<1x256xi1> to vector<1x256xi1>
    %404 = vector.broadcast %403 : vector<1x256xi1> to vector<8x256xi1>
    %405 = vector.broadcast %cst_155 : f32 to vector<8x256xf32>
    %406 = arith.select %404, %402, %405 : vector<8x256xi1>, vector<8x256xf32>
    %407 = tpu.concatenate %371, %376, %381, %386, %362, %391, %396, %401, %406 in 0 : vector<8x256xf32>, vector<8x256xf32>, vector<8x256xf32>, vector<8x256xf32>, vector<8x256xf32>, vector<8x256xf32>, vector<8x256xf32>, vector<8x256xf32>, vector<8x256xf32> -> vector<72x256xf32>
    %408 = arith.truncf %364 : vector<8x72xf32> to vector<8x72xbf16>
    %409 = arith.truncf %407 : vector<72x256xf32> to vector<72x256xbf16>
    %cst_156 = arith.constant dense<0.000000e+00> : vector<8x256xf32>
    %410 = tpu.matmul %408, %409, %cst_156 {dimension_numbers = #tpu.dot_dimension_numbers<[1], [0], [0], [1], [0, 0, 1, 1], [], []>} : vector<8x72xbf16>, vector<72x256xbf16>, vector<8x256xf32> -> vector<8x256xf32>
    %411 = vector.broadcast %366 : vector<8x1xf32> to vector<8x256xf32>
    %412 = arith.addf %410, %411 : vector<8x256xf32>
    %413 = arith.addf %248, %412 : vector<8x256xf32>
    %c0_157 = arith.constant 0 : index
    %c0_158 = arith.constant 0 : index
    %c0_159 = arith.constant 0 : index
    %414 = vector.load %arg5[%c0_157, %c0_158, %c0_159] : memref<1x8x256xf32, #tpu.memory_space<vmem>>, vector<1x8x256xf32>
    %415 = vector.shape_cast %414 : vector<1x8x256xf32> to vector<8x256xf32>
    %416 = vector.shape_cast %413 : vector<8x256xf32> to vector<1x8x256xf32>
    tpu.vector_store %arg5[%c0_157, %c0_158, %c0_159], %416 {strides = array<i32>} : memref<1x8x256xf32, #tpu.memory_space<vmem>>, vector<1x8x256xf32>,
    return
  }
  func.func @transform_0(%arg0: i32) -> (i32, i32, i32) {
    %c0_i32 = arith.constant 0 : i32
    %c0_i32_0 = arith.constant 0 : i32
    %c0_i32_1 = arith.constant 0 : i32
    return %arg0, %c0_i32, %c0_i32_0 : i32, i32, i32
  }
  func.func @transform_1(%arg0: i32) -> (i32, i32, i32) {
    %c0_i32 = arith.constant 0 : i32
    %c0_i32_0 = arith.constant 0 : i32
    %c0_i32_1 = arith.constant 0 : i32
    %c0_i32_2 = arith.constant 0 : i32
    return %c0_i32, %c0_i32_0, %c0_i32_1 : i32, i32, i32
  }
  func.func @transform_2(%arg0: i32) -> (i32, i32, i32) {
    %c0_i32 = arith.constant 0 : i32
    %c0_i32_0 = arith.constant 0 : i32
    %c0_i32_1 = arith.constant 0 : i32
    %c0_i32_2 = arith.constant 0 : i32
    return %c0_i32, %c0_i32_0, %c0_i32_1 : i32, i32, i32
  }
  func.func @transform_3(%arg0: i32) -> (i32, i32, i32) {
    %c0_i32 = arith.constant 0 : i32
    %c0_i32_0 = arith.constant 0 : i32
    %c0_i32_1 = arith.constant 0 : i32
    %c0_i32_2 = arith.constant 0 : i32
    return %c0_i32, %c0_i32_0, %c0_i32_1 : i32, i32, i32
  }
  func.func @transform_4(%arg0: i32) -> (i32, i32, i32) {
    %c0_i32 = arith.constant 0 : i32
    %c0_i32_0 = arith.constant 0 : i32
    %c0_i32_1 = arith.constant 0 : i32
    return %arg0, %c0_i32, %c0_i32_0 : i32, i32, i32
  }
}

</mosaic_0001>

<bundles_post_ra>
// kernel: mid_block_forward.1
= control target key start
LH: loop header
LB: loop body
LE: loop exit
PB: predicated region body
PF: predicated region fallthrough
CT: control target
= control target key end

     0   :  { %s5317_s15 = smov 0   ;;  %s5951_s0 = inlined_call_operand.vmem [shape: f32[2,8,256], index: 0, kind: input, shape index: {}]   ;;  %s5952_s1 = inlined_call_operand.vmem [shape: f32[8,8,1], index: 1, kind: input, shape index: {}]   ;;  %s5953_s2 = inlined_call_operand.vmem [shape: f32[4,8,72], index: 2, kind: input, shape index: {}]   ;;  %s5954_s3 = inlined_call_operand.vmem [shape: f32[4,8,1], index: 3, kind: input, shape index: {}]   ;;  %s5955_s4 = inlined_call_operand.vmem [shape: f32[2,8,256], index: 4, kind: output, shape index: {}]  }
   0x1 LB: > { %s4809_s16 = sadd.s32 4294967295, %s5279_s15   ;;  %p4813_p0 = scmp.ge.s32.totalorder %s5279_s15, 1  ;;  %s5279_s15 = sphi %s5317_s15, %s14_s15  }
   0x2   : > { %p162_p1 = scmp.lt.s32.totalorder %s5279_s15, 3 }
   0x4   : > { %p163_p2 = pnand %p4813_p0, %p162_p1 }
   0x5   : > { %p188_p3 = scmp.lt.s32.totalorder (!%p163_p2), %s4809_s16, 1  ;;  %v201_v0 = vlaneseq (!%p163_p2)  ;;  %v5281_v1 = vmov (!%p163_p2), 0.0   ;;  %v257_v43 = vld [vmem:[%s5952_s1] sm:$0xff] (!%p163_p2)  ;;  %v5282_v44 = vmov (!%p163_p2), 0   ;;  %v4819_v45 = vld [vmem:[%s5952_s1 + $0x8] sm:$0xff] (!%p163_p2)  ;;  %s5283_s25 = smov (!%p163_p2), 16  }
   0x6   : > { %166 = sbr.rel (%p163_p2) target bundleno = 4909 (0x132d), region = 36  ;;  %334 = vmatprep.mubr.f32.mxu0 (!%p163_p2), %v5281_v1  ;;  %807 = vmatprep.mubr.f32.mxu1 (!%p163_p2), %v5281_v1  ;;  %s5284_s26 = smov (!%p163_p2), 17  }
   0x7   : > { %v202_v2 = vshrl.u32 (!%p163_p2), %v201_v0, 7  ;;  %v5329_v3 = vand.u32 (!%p163_p2), 127, %v201_v0  ;;  %5071 = vset.pattern.permute.xlu1 (!%p163_p2), %v5282_v44  ;;  %5112 = vset.pattern.permute.xlu0 (!%p163_p2), %v5282_v44  ;;  %s5285_s27 = smov (!%p163_p2), 15   ;;  %s5286_s28 = smov (!%p163_p2), 111  }
   0x8   : > { %1216 = vperm.xlu1 (!%p163_p2), %5071, %v257_v43   ;;  %s5287_s29 = smov (!%p163_p2), 1   ;;  %s5288_s30 = smov (!%p163_p2), 127  }
   0x9   : > { %vm206_vm0 = vcmp.lt.s32.totalorder (!%p163_p2), %v202_v2, 2  ;;  %vm210_vm1 = vcmp.lt.s32.totalorder (!%p163_p2), %v5329_v3, 2  ;;  %vm212_vm2 = vcmp.ge.s32.totalorder (!%p163_p2), %v202_v2, 2  ;;  %vm213_vm3 = vcmp.lt.s32.totalorder (!%p163_p2), %v202_v2, 4  ;;  %s5289_s5 = smov (!%p163_p2), 113   ;;  %s5290_s6 = smov (!%p163_p2), 112  }
   0xa   : > { %vm5338_vm4 = vmand (!%p163_p2), %vm206_vm0, %vm210_vm1  ;;  %vm215_vm5 = vcmp.ge.s32.totalorder (!%p163_p2), %v5329_v3, 2  ;;  %vm217_vm6 = vcmp.lt.s32.totalorder (!%p163_p2), %v5329_v3, 4  ;;  %vm220_vm9 = vcmp.ge.s32.totalorder (!%p163_p2), %v202_v2, 4  ;;  %vm221_vm10 = vcmp.lt.s32.totalorder (!%p163_p2), %v202_v2, 6 }
   0xb   : > { %vm214_vm7 = vmand (!%p163_p2), %vm212_vm2, %vm213_vm3  ;;  %vm223_vm12 = vcmp.ge.s32.totalorder (!%p163_p2), %v5329_v3, 4  ;;  %vm225_vm14 = vcmp.lt.s32.totalorder (!%p163_p2), %v5329_v3, 6  ;;  %vm228_vm1 = vcmp.ge.s32.totalorder (!%p163_p2), %v202_v2, 6  ;;  %vm231_vm2 = vcmp.ge.s32.totalorder (!%p163_p2), %v5329_v3, 6 }
   0xc   : > { %vm216_vm8 = vmand (!%p163_p2), %vm214_vm7, %vm215_vm5  ;;  %vm233_vm5 = vcmp.lt.s32.totalorder (!%p163_p2), %v5329_v3, 8  ;;  %1223 = vperm.xlu1 (!%p163_p2), %5071, %v4819_v45  }
   0xd   : > { %s6057_s16 = smov (!%p188_p3, %s4809_s16), 1  ;;  %vm5350_vm11 = vmand %vm216_vm8, %vm217_vm6  ;;  %vm5961_vm8 = vcmask 64512  }
   0xe   : > { %s4970_s17 = sshll.u32 %s6057_s16, 4  ;;  %vm219_vm13 = vmor %vm5338_vm4, %vm5350_vm11 }
   0xf   : > { %s192_s20 = scalar_lea.vmem %s5951_s0, %s4970_s17  ;;  %vm222_vm15 = vmand %vm220_vm9, %vm221_vm10  ;;  %vm241_vm9 = vcmp.ge.s32.totalorder %v5329_v3, 16 }
  0x10   : > { %v5344_v5 = vld [vmem:[%s192_s20 + $0x8] sm:$0xff]  ;;  %v5346_v6 = vld [vmem:[%s192_s20] sm:$0xff]  ;;  %vm224_vm0 = vmand %vm222_vm15, %vm223_vm12  ;;  %vm5959_vm12 = vcmp.lt.s32.totalorder %v5329_v3, 16 }
  0x11   : > { %v268_v7 = vand.u32 4294901760, %v5344_v5  ;;  %v270_v8 = vand.u32 4294901760, %v5346_v6  ;;  %vm226_vm3 = vmand %vm224_vm0, %vm225_vm14  ;;  %vm5291_vm0 = vmmov 1  }
  0x12   : > { %vm227_vm6 = vmor %vm219_vm13, %vm226_vm3  ;;  %vm5960_vm13 = vcmp.lt.s32.totalorder %v5329_v3, 17  ;;  %vm5958_vm3 = vcmp.lt.s32.totalorder %v5329_v3, 15 }
  0x13   : > { %269 = vmatprep.subr.mxu0 %v268_v7  ;;  %v347_v10 = vsub.f32 %v5344_v5, %v268_v7  ;;  %v353_v12 = vsub.f32 %v5346_v6, %v270_v8  ;;  %vm232_vm7 = vmand %vm228_vm1, %vm231_vm2 }
  0x14   : > { %271 = vmatpush1.msra.mxu0 %v270_v8  ;;  %vm234_vm4 = vmand %vm232_vm7, %vm233_vm5 }
  0x15   : > { %v348_v11 = vand.u32 4294901760, %v347_v10  ;;  %vm235_vm11 = vmor %vm227_vm6, %vm234_vm4  ;;  %v354_v15 = vand.u32 4294901760, %v353_v12  ;;  %vm5956_vm6 = vcmp.lt.s32.totalorder %v5329_v3, 1 }
  0x16   : > { %v5365_v16 = vsel %vm235_vm11, 1.0, %v5281_v1 }
  0x17   : > { %v349_v13 = vsub.f32 %v347_v10, %v348_v11  ;;  %v266_v17 = vsel %vm5961_vm8, %v5365_v16, 0  ;;  %v355_v19 = vsub.f32 %v353_v12, %v354_v15 }
  0x18   : > { %v5369_v18 = vsub.f32 %v266_v17, %v266_v17 }
  0x19   : > { %v350_v14 = vand.u32 4294901760, %v349_v13  ;;  %v356_v22 = vand.u32 4294901760, %v355_v19  ;;  %v5436_v13 = vadd.s32 128, %v5329_v3 }
  0x1a   : > { %v5372_v20 = vand.u32 4294901760, %v5369_v18 }
  0x1b   : > { %351 = vmatprep.subr.mxu0 %v350_v14  ;;  %v239_v14 = vand.u32 15, %v5329_v3 }
  0x1c   : > { %v338_v21 = vsub.f32 %v5369_v18, %v5372_v20 }
  0x1d   : > { %vm5441_vm10 = vcmp.ge.s32.totalorder %v239_v14, 1  ;;  %vm5481_vm5 = vcmp.le.s32.totalorder %v239_v14, 14 }
  0x1e   : > { %v5376_v23 = vand.u32 4294901760, %v338_v21  ;;  %vm245_vm15 = vmand %vm241_vm9, %vm5441_vm10 }
  0x1f   : > { %vm5472_vm2 = vmpackc.low %vm241_vm9, %vm245_vm15 }
  0x20   : > { %340 = vmatmul.mubr.f32.vlgmr.msra.gmra.mrb[0].mxu0 %v5376_v23  ;;  %vm249_vm7 = vmand %vm241_vm9, %vm5481_vm5  ;;  %vm5957_vm9 = vcmp.lt.s32.totalorder %v5329_v3, 127 }
  0x21   : > { %357 = vmatpush1.msra.mxu0 %v356_v22  ;;  %420 = vmatprep.mubr.f32.mxu0 %v5281_v1  ;;  %vm5513_vm15 = vmpackc.low %vm5441_vm10, %vm249_vm7 }
  0x22   : > { %430 = vmatprep.subr.mxu0 %v347_v10 }
  0x28   : > { %4822 = vmatmul.mubr.msk.f32.vlgmr.msra.gmra.mrb[0].mxu0 %vm5961_vm8, %v5365_v16 }
  0x29   : > { %433 = vmatpush1.msra.mxu0 %v353_v12  ;;  %496 = vmatprep.mubr.f32.mxu0 %v5281_v1  ;;  %v1243_v12 = vld [vmem:[%s5954_s3] sm:$0xff] }
  0x2a   : > { %506 = vmatprep.subr.mxu0 %v268_v7 }
  0x30   : > { %499 = vmatmul.mubr.f32.vlgmr.msra.gmra.mrb[0].mxu0 %v5369_v18 }
  0x31   : > { %508 = vmatpush1.msra.mxu0 %v270_v8  ;;  %571 = vmatprep.mubr.f32.mxu0 %v5281_v1 }
  0x32   : > { %584 = vmatprep.subr.mxu0 %v348_v11 }
  0x38   : > { %575 = vmatmul.mubr.f32.vlgmr.msra.gmra.mrb[0].mxu0 %v5372_v20 }
  0x39   : > { %588 = vmatpush1.msra.mxu0 %v354_v15  ;;  %651 = vmatprep.mubr.f32.mxu0 %v5281_v1  ;;  %v240_v15 = vand.u32 15, %v5436_v13 }
  0x3a   : > { %660 = vmatprep.subr.mxu0 %v268_v7 }
  0x3b   : > { %vm5447_vm14 = vcmp.ge.s32.totalorder %v240_v15, 1  ;;  %vm5490_vm4 = vcmp.le.s32.totalorder %v240_v15, 14 }
  0x3c   : > { %vm5466_vm1 = vmpackc.low %vm5291_vm0, %vm5447_vm14 }
  0x3d   : > { %vm5506_vm11 = vmpackc.low %vm5447_vm14, %vm5490_vm4 }
  0x3e   : > { %vm5528_vm7 = vmpackc.low %vm5490_vm4, %vm5291_vm0 }
  0x40   : > { %4823 = vmatmul.mubr.msk.f32.vlgmr.msra.gmra.mrb[0].mxu0 %vm5961_vm8, %v5365_v16 }
  0x41   : > { %662 = vmatpush1.msra.mxu0 %v270_v8  ;;  %725 = vmatprep.mubr.f32.mxu0 %v5281_v1 }
  0x48   : > { %4824 = vmatmul.mubr.msk.f32.vlgmr.msra.gmra.mrb[0].mxu0 %vm5961_vm8, %v5365_v16 }
  0x49   : > { %1407 = vmatprep.mubr.bf16.mxu0 %v5282_v44 }
  0x87   : > { %v1217_v52 = vpop.permute.xlu1 %1216 }
  0x8b   : > { %v1224_v58 = vpop.permute.xlu1 %1223 }
 0x11b   : > { %v728_v24 = vpop.f32.mrb[0].mxu0 }
 0x11c   : > { %v730_v25 = vpop.f32.mrb[1].mxu0 }
 0x11d   : > { %v733_v26 = vadd.f32 %v730_v25, %v728_v24 }
 0x11f   : > { %734 = vadd.xlane.f32.xlu0 %v733_v26 }
 0x1ac   : > { %v735_v27 = vpop.xlane.xlu0 %734 }
 0x1ad   : > { %v736_v28 = vmul.f32 0.001953125, %v735_v27 }
 0x1af   : > { %v737_v29 = vsub.f32 %v5346_v6, %v736_v28  ;;  %v738_v30 = vsub.f32 %v5344_v5, %v736_v28 }
 0x1b1   : > { %v739_v31 = vmul.f32 %v737_v29, %v737_v29  ;;  %v740_v32 = vmul.f32 %v738_v30, %v738_v30 }
 0x1b3   : > { %v741_v33 = vand.u32 4294901760, %v740_v32  ;;  %v743_v34 = vand.u32 4294901760, %v739_v31 }
 0x1b5   : > { %v820_v35 = vsub.f32 %v740_v32, %v741_v33  ;;  %v826_v36 = vsub.f32 %v739_v31, %v743_v34  ;;  %742 = vmatprep.subr.mxu1 %v741_v33 }
 0x1b6   : > { %744 = vmatpush1.msra.mxu1 %v743_v34 }
 0x1b7   : > { %813 = vmatmul.mubr.f32.vlgmr.msra.gmra.mrb[0].mxu1 %v5376_v23  ;;  %v821_v37 = vand.u32 4294901760, %v820_v35  ;;  %v827_v38 = vand.u32 4294901760, %v826_v36 }
 0x1b8   : > { %893 = vmatprep.mubr.f32.mxu1 %v5281_v1 }
 0x1b9   : > { %v822_v39 = vsub.f32 %v820_v35, %v821_v37  ;;  %v828_v40 = vsub.f32 %v826_v36, %v827_v38 }
 0x1bb   : > { %v823_v41 = vand.u32 4294901760, %v822_v39  ;;  %v829_v42 = vand.u32 4294901760, %v828_v40 }
 0x1bd   : > { %824 = vmatprep.subr.mxu1 %v823_v41 }
 0x1be   : > { %830 = vmatpush1.msra.mxu1 %v829_v42 }
 0x1bf   : > { %4825 = vmatmul.mubr.msk.f32.vlgmr.msra.gmra.mrb[0].mxu1 %vm5961_vm8, %v5365_v16  ;;  %903 = vmatprep.subr.mxu1 %v820_v35 }
 0x1c0   : > { %906 = vmatpush1.msra.mxu1 %v826_v36  ;;  %969 = vmatprep.mubr.f32.mxu1 %v5281_v1 }
 0x1c1   : > { %979 = vmatprep.subr.mxu1 %v741_v33 }
 0x1c7   : > { %972 = vmatmul.mubr.f32.vlgmr.msra.gmra.mrb[0].mxu1 %v5369_v18 }
 0x1c8   : > { %981 = vmatpush1.msra.mxu1 %v743_v34  ;;  %1044 = vmatprep.mubr.f32.mxu1 %v5281_v1 }
 0x1c9   : > { %1057 = vmatprep.subr.mxu1 %v821_v37 }
 0x1cf   : > { %1048 = vmatmul.mubr.f32.vlgmr.msra.gmra.mrb[0].mxu1 %v5372_v20 }
 0x1d0   : > { %1061 = vmatpush1.msra.mxu1 %v827_v38  ;;  %1124 = vmatprep.mubr.f32.mxu1 %v5281_v1 }
 0x1d1   : > { %1133 = vmatprep.subr.mxu1 %v741_v33 }
 0x1d7   : > { %4826 = vmatmul.mubr.msk.f32.vlgmr.msra.gmra.mrb[0].mxu1 %vm5961_vm8, %v5365_v16 }
 0x1d8   : > { %1135 = vmatpush1.msra.mxu1 %v743_v34  ;;  %1198 = vmatprep.mubr.f32.mxu1 %v5281_v1 }
 0x1df   : > { %4827 = vmatmul.mubr.msk.f32.vlgmr.msra.gmra.mrb[0].mxu1 %vm5961_vm8, %v5365_v16  ;;  %vm1326_vm8 = vcmp.lt.s32.totalorder %v5329_v3, 112 }
 0x1e0   : > { %1482 = vmatprep.mubr.f32.mxu1 %v5281_v1 }
 0x2b2   : > { %v1201_v46 = vpop.f32.mrb[0].mxu1 }
 0x2b3   : > { %v1203_v47 = vpop.f32.mrb[1].mxu1 }
 0x2b4   : > { %v1206_v48 = vadd.f32 %v1203_v47, %v1201_v46 }
 0x2b6   : > { %1207 = vadd.xlane.f32.xlu0 %v1206_v48 }
 0x343   : > { %v1208_v49 = vpop.xlane.xlu0 %1207 }
 0x344   : > { %v1209_v50 = vmul.f32 0.001953125, %v1208_v49 }
 0x346   : > { %v1210_v51 = vadd.f32 1e-06, %v1209_v50 }
 0x348   : > { %5233 = vrsqrt.f32 %v1210_v51 }
 0x352   : > { %v5234_v53 = vpop.eup %5233 }
 0x353   : > { %v1212_v54 = vmul.f32 %v5234_v53, %v737_v29  ;;  %v1213_v55 = vmul.f32 %v5234_v53, %v738_v30 }
 0x355   : > { %v1219_v56 = vmul.f32 %v1217_v52, %v1212_v54  ;;  %v1220_v57 = vmul.f32 %v1217_v52, %v1213_v55 }
 0x357   : > { %v1226_v59 = vadd.f32 %v1224_v58, %v1219_v56  ;;  %v1227_v60 = vadd.f32 %v1224_v58, %v1220_v57 }
 0x359   : > { %v4828_v61 = vmul.f32 -1.442695, %v1226_v59  ;;  %v4829_v62 = vmul.f32 -1.442695, %v1227_v60 }
 0x35b   : > { %5235 = vpow2.f32 %v4828_v61 }
 0x35c   : > { %5237 = vpow2.f32 %v4829_v62 }
 0x365   : > { %v5236_v63 = vpop.eup %5235 }
 0x366   : > { %v5238_v0 = vpop.eup %5237  ;;  %v1234_v2 = vadd.f32 1.0, %v5236_v63 }
 0x367   : > { %v1235_v4 = vadd.f32 1.0, %v5238_v0 }
 0x368   : > { %5239 = vrcp.f32 %v1234_v2 }
 0x369   : > { %5241 = vrcp.f32 %v1235_v4 }
 0x372   : > { %v5240_v7 = vpop.eup %5239 }
 0x373   : > { %v5242_v8 = vpop.eup %5241  ;;  %v5418_v9 = vmul.f32 %v5240_v7, %v1226_v59 }
 0x374   : > { %v5420_v10 = vmul.f32 %v5242_v8, %v1227_v60 }
 0x376   : > { %v5077_v11 = vpack.i.bf16 %v5420_v10, %v5418_v9 }
 0x378   : > { %5078 = vrot.lane.b32.xlu1 %v5077_v11, %s5283_s25  ;;  %5073 = vrot.lane.b32.xlu0 %v5077_v11, %s5284_s26 }
 0x37c   : > { %5083 = vrot.lane.b32.xlu1 %v5077_v11, %s5285_s27  ;;  %5108 = vrot.lane.b32.xlu0 %v5077_v11, %s5286_s28 }
 0x380   : > { %5088 = vrot.lane.b32.xlu1 %v5077_v11, %s5287_s29 }
 0x384   : > { %5093 = vrot.lane.b32.xlu1 %v5077_v11, %s5288_s30 }
 0x388   : > { %5098 = vrot.lane.b32.xlu1 %v5077_v11, %s5289_s5 }
 0x38c   : > { %5103 = vrot.lane.b32.xlu1 %v5077_v11, %s5290_s6 }
 0x390   : > { %1361 = vperm.xlu1 %5071, %v1243_v12  }
 0x3ea   : > { %v5079_v19 = vpop.permute.xlu1 %5078  ;;  %v5074_v21 = vpop.permute.xlu0 %5073 }
 0x3eb   : > { %v5081_v24 = vunpack.i.h.bf16 %v5079_v19  ;;  %v5080_v25 = vunpack.i.l.bf16 %v5079_v19  ;;  %v5076_v26 = vunpack.i.h.bf16 %v5074_v21  ;;  %v5075_v27 = vunpack.i.l.bf16 %v5074_v21 }
 0x3ed   : > { %v1262_v28 = vsel %vm5959_vm12, %v5080_v25, %v5081_v24  ;;  %v1263_v29 = vsel %vm5959_vm12, %v5081_v24, %v5080_v25  ;;  %v1249_v30 = vsel %vm5960_vm13, %v5075_v27, %v5076_v26  ;;  %v1250_v31 = vsel %vm5960_vm13, %v5076_v26, %v5075_v27 }
 0x3ee   : > { %v4831_v33 = vpack.c.bf16 %v1262_v28, %v1249_v30  ;;  %v4834_v34 = vpack.c.bf16 %v1263_v29, %v1250_v31  ;;  %v5084_v35 = vpop.permute.xlu1 %5083  ;;  %v5109_v50 = vpop.permute.xlu0 %5108  ;;  %vm1313_vm13 = vcmp.lt.s32.totalorder %v5329_v3, 113 }
 0x3ef   : > { %v5086_v37 = vunpack.i.h.bf16 %v5084_v35  ;;  %v5085_v38 = vunpack.i.l.bf16 %v5084_v35  ;;  %v5111_v57 = vunpack.i.h.bf16 %v5109_v50  ;;  %v5110_v58 = vunpack.i.l.bf16 %v5109_v50 }
 0x3f0   : > { %4832 = vmatprep.subr.msk.bf16.mxu0 %vm5466_vm1, %v4831_v33 }
 0x3f1   : > { %4835 = vmatpush1.bf16.msk.msra.mxu0 %vm5472_vm2, %v4834_v34  ;;  %v1275_v45 = vsel %vm5958_vm3, %v5085_v38, %v5086_v37  ;;  %v1276_v46 = vsel %vm5958_vm3, %v5086_v37, %v5085_v38  ;;  %vm252_vm3 = vcmp.lt.s32.totalorder %v5436_v13, 240  ;;  %v1242_v13 = vld [vmem:[%s5953_s2] sm:$0xff] }
 0x3f2   : > { %v5089_v40 = vpop.permute.xlu1 %5088  ;;  %vm5555_vm12 = vmand %vm252_vm3, %vm5490_vm4  ;;  %v1348_v33 = vpack.c.bf16 %v1242_v13, %v1242_v13 }
 0x3f3   : > { %v5091_v41 = vunpack.i.h.bf16 %v5089_v40  ;;  %v5090_v42 = vunpack.i.l.bf16 %v5089_v40  ;;  %vm5586_vm4 = vmpackc.low %vm5291_vm0, %vm5441_vm10  ;;  %vm5963_vm10 = vcmask 588800  }
 0x3f5   : > { %v1288_v47 = vsel %vm5956_vm6, %v5090_v42, %v5091_v41  ;;  %v1289_v48 = vsel %vm5956_vm6, %v5091_v41, %v5090_v42  ;;  %vm5962_vm6 = vcmp.lt.s32.totalorder %v5329_v3, 111 }
 0x3f6   : > { %v4837_v51 = vpack.c.bf16 %v1288_v47, %v1275_v45  ;;  %v4840_v52 = vpack.c.bf16 %v1289_v48, %v1276_v46  ;;  %v5094_v53 = vpop.permute.xlu1 %5093  ;;  %v1340_v4 = vsel %vm5962_vm6, %v5110_v58, %v5111_v57  ;;  %v1341_v7 = vsel %vm5962_vm6, %v5111_v57, %v5110_v58  ;;  %vm254_vm6 = vmand %vm252_vm3, %vm5447_vm14 }
 0x3f7   : > { %v5096_v55 = vunpack.i.h.bf16 %v5094_v53  ;;  %v5095_v56 = vunpack.i.l.bf16 %v5094_v53  ;;  %v1347_v15 = vsel %vm5555_vm12, %v1341_v7, 0.0  ;;  %v1346_v19 = vsel %vm5481_vm5, %v1340_v4, 0.0  ;;  %vm5579_vm14 = vmpackc.low %vm252_vm3, %vm254_vm6 }
 0x3f8   : > { %4838 = vmatprep.subr.msk.bf16.mxu0 %vm5506_vm11, %v4837_v51  ;;  %v1358_v30 = vpack.c.bf16 %v1347_v15, %v1347_v15  ;;  %v1357_v31 = vpack.c.bf16 %v1346_v19, %v1346_v19  ;;  %vm5964_vm3 = vcmask 1043456  }
 0x3f9   : > { %v1301_v59 = vsel %vm5957_vm9, %v5095_v56, %v5096_v55  ;;  %v1302_v60 = vsel %vm5957_vm9, %v5096_v55, %v5095_v56  ;;  %4841 = vmatpush1.bf16.msk.msra.mxu0 %vm5513_vm15, %v4840_v52  ;;  %vm5538_vm9 = vmpackc.low %vm5481_vm5, %vm5291_vm0  ;;  %vm5995_vm0 = vcmask 64512  }
 0x3fa   : > { %v4843_v62 = vpack.c.bf16 %v1302_v60, %v5420_v10  ;;  %v4846_v63 = vpack.c.bf16 %v1301_v59, %v5418_v9  ;;  %v5099_v0 = vpop.permute.xlu1 %5098  ;;  %v1370_v17 = vsel %vm5964_vm3, %v1357_v31, 0  ;;  %vm5996_vm6 = vmmov %vm5995_vm0 }
 0x3fb   : > { %v5101_v8 = vunpack.i.h.bf16 %v5099_v0  ;;  %v5100_v9 = vunpack.i.l.bf16 %v5099_v0 }
 0x3fc   : > { %4844 = vmatprep.subr.msk.bf16.mxu0 %vm5528_vm7, %v4843_v62 }
 0x3fd   : > { %4847 = vmatpush1.bf16.msk.msra.mxu0 %vm5538_vm9, %v4846_v63  ;;  %v1314_v21 = vsel %vm1313_vm13, %v5100_v9, %v5101_v8  ;;  %v1315_v24 = vsel %vm1313_vm13, %v5101_v8, %v5100_v9 }
 0x3fe   : > { %v5104_v11 = vpop.permute.xlu1 %5103 }
 0x3ff   : > { %v5106_v12 = vunpack.i.h.bf16 %v5104_v11  ;;  %v5105_v14 = vunpack.i.l.bf16 %v5104_v11 }
 0x401   : > { %v1327_v22 = vsel %vm1326_vm8, %v5105_v14, %v5106_v12  ;;  %v1328_v25 = vsel %vm1326_vm8, %v5106_v12, %v5105_v14 }
 0x402   : > { %v4849_v27 = vpack.c.bf16 %v1328_v25, %v1315_v24  ;;  %v4852_v28 = vpack.c.bf16 %v1327_v22, %v1314_v21  ;;  %v4820_v22 = vld [vmem:[%s5952_s1 + $0x10] sm:$0xff] }
 0x404   : > { %4850 = vmatprep.subr.msk.bf16.mxu0 %vm5579_vm14, %v4849_v27 }
 0x405   : > { %4853 = vmatpush1.bf16.msk.msra.mxu0 %vm5586_vm4, %v4852_v28 }
 0x406   : > { %4854 = vmatprep.subr.msk.bf16.mxu0 %vm5964_vm3, %v1358_v30  ;;  %v4821_v30 = vld [vmem:[%s5952_s1 + $0x18] sm:$0xff] }
 0x409   : > { %1384 = vmatpush1.bf16.msra.mxu0 %v1370_v17 }
 0x40c   : > { %4855 = vmatmul.mubr.msk.bf16.vlgmr.msra.gmra.mrb[4].mxu0 %vm5963_vm10, %v1348_v33  ;;  %vm6001_vm10 = vcmp.lt.s32.totalorder %v5329_v3, 16 }
 0x40d   : > { %1955 = vmatprep.mubr.f32.mxu0 %v5281_v1  ;;  %vm6002_vm3 = vmmov %vm6001_vm10 }
 0x40f   : > { %v1362_v34 = vpop.permute.xlu1 %1361 }
 0x4df   : > { %v1409_v35 = vpop.f32.mrb[4].mxu0 }
 0x4e0   : > { %v1410_v37 = vadd.f32 %v1409_v35, %v1362_v34  ;;  %v1411_v38 = vpop.f32.mrb[5].mxu0 }
 0x4e1   : > { %v1412_v40 = vadd.f32 %v1411_v38, %v1362_v34  ;;  %v1413_v41 = vpop.f32.mrb[6].mxu0 }
 0x4e2   : > { %v1418_v42 = vand.u32 4294901760, %v1410_v37  ;;  %v1414_v43 = vpop.f32.mrb[7].mxu0 }
 0x4e3   : > { %v1416_v45 = vand.u32 4294901760, %v1412_v40 }
 0x4e4   : > { %v1501_v46 = vsub.f32 %v1410_v37, %v1418_v42 }
 0x4e5   : > { %v1495_v47 = vsub.f32 %v1412_v40, %v1416_v45  ;;  %1417 = vmatprep.subr.mxu1 %v1416_v45 }
 0x4e6   : > { %v1502_v48 = vand.u32 4294901760, %v1501_v46  ;;  %1419 = vmatpush1.msra.mxu1 %v1418_v42 }
 0x4e7   : > { %1488 = vmatmul.mubr.f32.vlgmr.msra.gmra.mrb[2].mxu1 %v5376_v23  ;;  %v1496_v50 = vand.u32 4294901760, %v1495_v47 }
 0x4e8   : > { %v1503_v51 = vsub.f32 %v1501_v46, %v1502_v48  ;;  %1568 = vmatprep.mubr.f32.mxu1 %v5281_v1 }
 0x4e9   : > { %v1497_v52 = vsub.f32 %v1495_v47, %v1496_v50 }
 0x4ea   : > { %v1504_v55 = vand.u32 4294901760, %v1503_v51 }
 0x4eb   : > { %v1498_v53 = vand.u32 4294901760, %v1497_v52 }
 0x4ed   : > { %1499 = vmatprep.subr.mxu1 %v1498_v53 }
 0x4ee   : > { %1505 = vmatpush1.msra.mxu1 %v1504_v55 }
 0x4ef   : > { %4856 = vmatmul.mubr.msk.f32.vlgmr.msra.gmra.mrb[2].mxu1 %vm5995_vm0, %v5365_v16  ;;  %1578 = vmatprep.subr.mxu1 %v1495_v47 }
 0x4f0   : > { %1581 = vmatpush1.msra.mxu1 %v1501_v46  ;;  %1644 = vmatprep.mubr.f32.mxu1 %v5281_v1 }
 0x4f1   : > { %1654 = vmatprep.subr.mxu1 %v1416_v45 }
 0x4f7   : > { %1647 = vmatmul.mubr.f32.vlgmr.msra.gmra.mrb[2].mxu1 %v5369_v18 }
 0x4f8   : > { %1656 = vmatpush1.msra.mxu1 %v1418_v42  ;;  %1719 = vmatprep.mubr.f32.mxu1 %v5281_v1 }
 0x4f9   : > { %1732 = vmatprep.subr.mxu1 %v1496_v50 }
 0x4ff   : > { %1723 = vmatmul.mubr.f32.vlgmr.msra.gmra.mrb[2].mxu1 %v5372_v20 }
 0x500   : > { %1736 = vmatpush1.msra.mxu1 %v1502_v48  ;;  %1799 = vmatprep.mubr.f32.mxu1 %v5281_v1 }
 0x501   : > { %1808 = vmatprep.subr.mxu1 %v1416_v45 }
 0x507   : > { %4857 = vmatmul.mubr.msk.f32.vlgmr.msra.gmra.mrb[2].mxu1 %vm5996_vm6, %v5365_v16  ;;  %vm5997_vm6 = vmmov %vm5995_vm0 }
 0x508   : > { %1810 = vmatpush1.msra.mxu1 %v1418_v42  ;;  %1873 = vmatprep.mubr.f32.mxu1 %v5281_v1 }
 0x50f   : > { %4858 = vmatmul.mubr.msk.f32.vlgmr.msra.gmra.mrb[2].mxu1 %vm5995_vm0, %v5365_v16 }
 0x510   : > { %2515 = vmatprep.mubr.bf16.mxu1 %v5282_v44 }
 0x5e2   : > { %v1876_v56 = vpop.f32.mrb[2].mxu1 }
 0x5e3   : > { %v1878_v57 = vpop.f32.mrb[3].mxu1 }
 0x5e4   : > { %v1881_v58 = vadd.f32 %v1878_v57, %v1876_v56 }
 0x5e6   : > { %1882 = vadd.xlane.f32.xlu0 %v1881_v58  ;;  %v4865_v58 = vld [vmem:[%s5954_s3 + $0x8] sm:$0xff] }
 0x5fc   : > { %2364 = vperm.xlu0 %5112, %v4820_v22  }
 0x673   : > { %v1883_v59 = vpop.xlane.xlu0 %1882 }
 0x674   : > { %v1884_v60 = vmul.f32 0.001953125, %v1883_v59 }
 0x676   : > { %v1885_v62 = vsub.f32 %v1410_v37, %v1884_v60  ;;  %v1886_v63 = vsub.f32 %v1412_v40, %v1884_v60 }
 0x678   : > { %v1887_v0 = vmul.f32 %v1885_v62, %v1885_v62  ;;  %v1888_v4 = vmul.f32 %v1886_v63, %v1886_v63 }
 0x67a   : > { %v1889_v7 = vand.u32 4294901760, %v1888_v4  ;;  %v1891_v8 = vand.u32 4294901760, %v1887_v0 }
 0x67b   : > { %v2365_v34 = vpop.permute.xlu0 %2364 }
 0x67c   : > { %v1968_v9 = vsub.f32 %v1888_v4, %v1889_v7  ;;  %v1974_v11 = vsub.f32 %v1887_v0, %v1891_v8  ;;  %1890 = vmatprep.subr.mxu0 %v1889_v7 }
 0x67d   : > { %1892 = vmatpush1.msra.mxu0 %v1891_v8 }
 0x67e   : > { %1961 = vmatmul.mubr.f32.vlgmr.msra.gmra.mrb[2].mxu0 %v5376_v23  ;;  %v1969_v12 = vand.u32 4294901760, %v1968_v9  ;;  %v1975_v14 = vand.u32 4294901760, %v1974_v11 }
 0x67f   : > { %2041 = vmatprep.mubr.f32.mxu0 %v5281_v1 }
 0x680   : > { %v1970_v15 = vsub.f32 %v1968_v9, %v1969_v12  ;;  %v1976_v19 = vsub.f32 %v1974_v11, %v1975_v14 }
 0x682   : > { %v1971_v21 = vand.u32 4294901760, %v1970_v15  ;;  %v1977_v24 = vand.u32 4294901760, %v1976_v19 }
 0x684   : > { %1972 = vmatprep.subr.mxu0 %v1971_v21 }
 0x685   : > { %1978 = vmatpush1.msra.mxu0 %v1977_v24 }
 0x686   : > { %4859 = vmatmul.mubr.msk.f32.vlgmr.msra.gmra.mrb[2].mxu0 %vm5997_vm6, %v5365_v16  ;;  %2051 = vmatprep.subr.mxu0 %v1968_v9  ;;  %vm5998_vm6 = vmmov %vm5995_vm0 }
 0x687   : > { %2054 = vmatpush1.msra.mxu0 %v1974_v11  ;;  %2117 = vmatprep.mubr.f32.mxu0 %v5281_v1 }
 0x688   : > { %2127 = vmatprep.subr.mxu0 %v1889_v7 }
 0x68e   : > { %2120 = vmatmul.mubr.f32.vlgmr.msra.gmra.mrb[2].mxu0 %v5369_v18 }
 0x68f   : > { %2129 = vmatpush1.msra.mxu0 %v1891_v8  ;;  %2192 = vmatprep.mubr.f32.mxu0 %v5281_v1 }
 0x690   : > { %2205 = vmatprep.subr.mxu0 %v1969_v12 }
 0x696   : > { %2196 = vmatmul.mubr.f32.vlgmr.msra.gmra.mrb[2].mxu0 %v5372_v20 }
 0x697   : > { %2209 = vmatpush1.msra.mxu0 %v1975_v14  ;;  %2272 = vmatprep.mubr.f32.mxu0 %v5281_v1 }
 0x698   : > { %2281 = vmatprep.subr.mxu0 %v1889_v7 }
 0x69e   : > { %4860 = vmatmul.mubr.msk.f32.vlgmr.msra.gmra.mrb[2].mxu0 %vm5995_vm0, %v5365_v16  ;;  %vm5999_vm0 = vcmp.lt.s32.totalorder %v5329_v3, 17 }
 0x69f   : > { %2283 = vmatpush1.msra.mxu0 %v1891_v8  ;;  %2346 = vmatprep.mubr.f32.mxu0 %v5281_v1 }
 0x6a6   : > { %4861 = vmatmul.mubr.msk.f32.vlgmr.msra.gmra.mrb[2].mxu0 %vm5998_vm6, %v5365_v16  ;;  %vm6000_vm6 = vmmov %vm5999_vm0 }
 0x6a7   : > { %2600 = vmatprep.mubr.f32.mxu0 %v5281_v1 }
 0x779   : > { %v2349_v25 = vpop.f32.mrb[2].mxu0 }
 0x77a   : > { %v2351_v27 = vpop.f32.mrb[3].mxu0 }
 0x77b   : > { %v2354_v28 = vadd.f32 %v2351_v27, %v2349_v25 }
 0x77d   : > { %2355 = vadd.xlane.f32.xlu1 %v2354_v28 }
 0x78e   : > { %2371 = vperm.xlu1 %5071, %v4821_v30  }
 0x80a   : > { %v2356_v31 = vpop.xlane.xlu1 %2355 }
 0x80b   : > { %v2357_v13 = vmul.f32 0.001953125, %v2356_v31 }
 0x80d   : > { %v2358_v17 = vadd.f32 1e-06, %v2357_v13 }
 0x80e   : > { %v2372_v41 = vpop.permute.xlu1 %2371 }
 0x80f   : > { %5243 = vrsqrt.f32 %v2358_v17 }
 0x819   : > { %v5244_v33 = vpop.eup %5243 }
 0x81a   : > { %v2360_v35 = vmul.f32 %v5244_v33, %v1885_v62  ;;  %v2361_v37 = vmul.f32 %v5244_v33, %v1886_v63 }
 0x81c   : > { %v2367_v38 = vmul.f32 %v2365_v34, %v2360_v35  ;;  %v2368_v40 = vmul.f32 %v2365_v34, %v2361_v37 }
 0x81e   : > { %v2374_v42 = vadd.f32 %v2372_v41, %v2367_v38  ;;  %v2375_v43 = vadd.f32 %v2372_v41, %v2368_v40 }
 0x820   : > { %v4862_v45 = vmul.f32 -1.442695, %v2374_v42  ;;  %v4863_v46 = vmul.f32 -1.442695, %v2375_v43 }
 0x822   : > { %5245 = vpow2.f32 %v4862_v45 }
 0x823   : > { %5247 = vpow2.f32 %v4863_v46 }
 0x82c   : > { %v5246_v47 = vpop.eup %5245 }
 0x82d   : > { %v5248_v48 = vpop.eup %5247  ;;  %v2382_v50 = vadd.f32 1.0, %v5246_v47 }
 0x82e   : > { %v2383_v51 = vadd.f32 1.0, %v5248_v48 }
 0x82f   : > { %5249 = vrcp.f32 %v2382_v50 }
 0x830   : > { %5251 = vrcp.f32 %v2383_v51 }
 0x839   : > { %v5250_v52 = vpop.eup %5249 }
 0x83a   : > { %v5252_v53 = vpop.eup %5251  ;;  %v5637_v55 = vmul.f32 %v5250_v52, %v2374_v42 }
 0x83b   : > { %v2389_v56 = vmul.f32 %v5252_v53, %v2375_v43 }
 0x83d   : > { %v5138_v57 = vpack.i.bf16 %v2389_v56, %v5637_v55 }
 0x83f   : > { %5139 = vrot.lane.b32.xlu0 %v5138_v57, %s5289_s5  ;;  %5114 = vrot.lane.b32.xlu1 %v5138_v57, %s5284_s26 }
 0x843   : > { %5149 = vrot.lane.b32.xlu0 %v5138_v57, %s5286_s28  ;;  %5119 = vrot.lane.b32.xlu1 %v5138_v57, %s5283_s25 }
 0x847   : > { %5124 = vrot.lane.b32.xlu1 %v5138_v57, %s5285_s27 }
 0x84b   : > { %5129 = vrot.lane.b32.xlu1 %v5138_v57, %s5287_s29 }
 0x84f   : > { %5134 = vrot.lane.b32.xlu1 %v5138_v57, %s5288_s30 }
 0x853   : > { %5144 = vrot.lane.b32.xlu1 %v5138_v57, %s5290_s6 }
 0x857   : > { %2471 = vperm.xlu1 %5071, %v4865_v58  }
 0x8b1   : > { %v5115_v59 = vpop.permute.xlu1 %5114  ;;  %v5140_v7 = vpop.permute.xlu0 %5139 }
 0x8b2   : > { %v5117_v60 = vunpack.i.h.bf16 %v5115_v59  ;;  %v5116_v62 = vunpack.i.l.bf16 %v5115_v59  ;;  %v5142_v42 = vunpack.i.h.bf16 %v5140_v7  ;;  %v5141_v43 = vunpack.i.l.bf16 %v5140_v7 }
 0x8b4   : > { %v2398_v8 = vsel %vm5999_vm0, %v5116_v62, %v5117_v60  ;;  %v2399_v9 = vsel %vm6000_vm6, %v5117_v60, %v5116_v62  ;;  %vm6005_vm0 = vcmp.lt.s32.totalorder %v5329_v3, 1  ;;  %v2438_v58 = vsel %vm1313_vm13, %v5141_v43, %v5142_v42 }
 0x8b5   : > { %v5120_v63 = vpop.permute.xlu1 %5119  ;;  %v5150_v25 = vpop.permute.xlu0 %5149  ;;  %vm6006_vm6 = vmmov %vm6005_vm0  ;;  %v2439_v59 = vsel %vm1313_vm13, %v5142_v42, %v5141_v43 }
 0x8b6   : > { %v5122_v0 = vunpack.i.h.bf16 %v5120_v63  ;;  %v5121_v4 = vunpack.i.l.bf16 %v5120_v63  ;;  %v5152_v33 = vunpack.i.h.bf16 %v5150_v25  ;;  %v5151_v34 = vunpack.i.l.bf16 %v5150_v25 }
 0x8b8   : > { %v2406_v11 = vsel %vm6001_vm10, %v5121_v4, %v5122_v0  ;;  %v2407_v12 = vsel %vm6002_vm3, %v5122_v0, %v5121_v4  ;;  %vm6003_vm10 = vcmp.lt.s32.totalorder %v5329_v3, 15 }
 0x8b9   : > { %v4867_v14 = vpack.c.bf16 %v2406_v11, %v2398_v8  ;;  %v4870_v15 = vpack.c.bf16 %v2407_v12, %v2399_v9  ;;  %v5125_v19 = vpop.permute.xlu1 %5124  ;;  %vm6004_vm3 = vmmov %vm6003_vm10  ;;  %v4864_v8 = vld [vmem:[%s5953_s2 + $0x8] sm:$0xff] }
 0x8ba   : > { %v5127_v21 = vunpack.i.h.bf16 %v5125_v19  ;;  %v5126_v24 = vunpack.i.l.bf16 %v5125_v19  ;;  %v2458_v11 = vpack.c.bf16 %v4864_v8, %v4864_v8 }
 0x8bb   : > { %4868 = vmatprep.subr.msk.bf16.mxu1 %vm5466_vm1, %v4867_v14 }
 0x8bc   : > { %4871 = vmatpush1.bf16.msk.msra.mxu1 %vm5472_vm2, %v4870_v15  ;;  %v2414_v30 = vsel %vm6003_vm10, %v5126_v24, %v5127_v21  ;;  %v2415_v31 = vsel %vm6004_vm3, %v5127_v21, %v5126_v24  ;;  %vm6007_vm10 = vcmp.lt.s32.totalorder %v5329_v3, 127 }
 0x8bd   : > { %v5130_v22 = vpop.permute.xlu1 %5129  ;;  %vm6008_vm3 = vmmov %vm6007_vm10 }
 0x8be   : > { %v5132_v27 = vunpack.i.h.bf16 %v5130_v22  ;;  %v5131_v28 = vunpack.i.l.bf16 %v5130_v22 }
 0x8c0   : > { %v2422_v13 = vsel %vm6005_vm0, %v5131_v28, %v5132_v27  ;;  %v2423_v17 = vsel %vm6006_vm6, %v5132_v27, %v5131_v28  ;;  %vm6009_vm0 = vcmp.lt.s32.totalorder %v5329_v3, 111 }
 0x8c1   : > { %v4873_v35 = vpack.c.bf16 %v2422_v13, %v2414_v30  ;;  %v4876_v37 = vpack.c.bf16 %v2423_v17, %v2415_v31  ;;  %v5135_v38 = vpop.permute.xlu1 %5134  ;;  %v2454_v47 = vsel %vm6009_vm0, %v5151_v34, %v5152_v33  ;;  %vm6010_vm6 = vmmov %vm6009_vm0  ;;  %vm6013_vm0 = vcmask 588800  }
 0x8c2   : > { %v5137_v40 = vunpack.i.h.bf16 %v5135_v38  ;;  %v5136_v41 = vunpack.i.l.bf16 %v5135_v38  ;;  %v2455_v48 = vsel %vm6010_vm6, %v5152_v33, %v5151_v34  ;;  %v2456_v62 = vsel %vm5481_vm5, %v2454_v47, 0.0 }
 0x8c3   : > { %4874 = vmatprep.subr.msk.bf16.mxu1 %vm5506_vm11, %v4873_v35  ;;  %v2457_v60 = vsel %vm5555_vm12, %v2455_v48, 0.0  ;;  %v2467_v7 = vpack.c.bf16 %v2456_v62, %v2456_v62  ;;  %vm6014_vm6 = vcmask 64512  }
 0x8c4   : > { %v2430_v45 = vsel %vm6007_vm10, %v5136_v41, %v5137_v40  ;;  %v2431_v46 = vsel %vm6008_vm3, %v5137_v40, %v5136_v41  ;;  %4877 = vmatpush1.bf16.msk.msra.mxu1 %vm5513_vm15, %v4876_v37  ;;  %v2468_v4 = vpack.c.bf16 %v2457_v60, %v2457_v60  ;;  %vm6011_vm10 = vcmask 1043456   ;;  %v4892_v41 = vld [vmem:[%s5952_s1 + $0x20] sm:$0xff] }
 0x8c5   : > { %v4879_v50 = vpack.c.bf16 %v2431_v46, %v2389_v56  ;;  %v4882_v51 = vpack.c.bf16 %v2430_v45, %v5637_v55  ;;  %v5145_v52 = vpop.permute.xlu1 %5144  ;;  %vm6012_vm3 = vmmov %vm6011_vm10 }
 0x8c6   : > { %v5147_v53 = vunpack.i.h.bf16 %v5145_v52  ;;  %v5146_v57 = vunpack.i.l.bf16 %v5145_v52  ;;  %v2478_v9 = vsel %vm6012_vm3, %v2467_v7, 0  ;;  %vm6016_vm3 = vmmov %vm6014_vm6 }
 0x8c7   : > { %4880 = vmatprep.subr.msk.bf16.mxu1 %vm5528_vm7, %v4879_v50 }
 0x8c8   : > { %v2446_v56 = vsel %vm1326_vm8, %v5146_v57, %v5147_v53  ;;  %v2447_v55 = vsel %vm1326_vm8, %v5147_v53, %v5146_v57  ;;  %4883 = vmatpush1.bf16.msk.msra.mxu1 %vm5538_vm9, %v4882_v51 }
 0x8c9   : > { %v4885_v63 = vpack.c.bf16 %v2447_v55, %v2439_v59  ;;  %v4888_v0 = vpack.c.bf16 %v2446_v56, %v2438_v58 }
 0x8cb   : > { %4886 = vmatprep.subr.msk.bf16.mxu1 %vm5579_vm14, %v4885_v63 }
 0x8cc   : > { %4889 = vmatpush1.bf16.msk.msra.mxu1 %vm5586_vm4, %v4888_v0 }
 0x8cd   : > { %4890 = vmatprep.subr.msk.bf16.mxu1 %vm6011_vm10, %v2468_v4  ;;  %vm6015_vm10 = vmmov %vm6014_vm6  ;;  %v4893_v4 = vld [vmem:[%s5952_s1 + $0x28] sm:$0xff] }
 0x8d0   : > { %2492 = vmatpush1.bf16.msra.mxu1 %v2478_v9 }
 0x8d3   : > { %4891 = vmatmul.mubr.msk.bf16.vlgmr.msra.gmra.mrb[4].mxu1 %vm6013_vm0, %v2458_v11  ;;  %vm6017_vm0 = vmmov %vm6016_vm3 }
 0x8d4   : > { %3073 = vmatprep.mubr.f32.mxu1 %v5281_v1 }
 0x8d6   : > { %v2472_v12 = vpop.permute.xlu1 %2471 }
 0x9a6   : > { %v2517_v14 = vpop.f32.mrb[4].mxu1 }
 0x9a7   : > { %v2518_v15 = vadd.f32 %v2517_v14, %v2472_v12  ;;  %v2519_v19 = vpop.f32.mrb[5].mxu1 }
 0x9a8   : > { %v2520_v21 = vadd.f32 %v2519_v19, %v2472_v12  ;;  %v2521_v24 = vpop.f32.mrb[6].mxu1 }
 0x9a9   : > { %v5712_v22 = vadd.f32 %v2518_v15, %v5346_v6  ;;  %v2522_v25 = vpop.f32.mrb[7].mxu1 }
 0x9aa   : > { %v5715_v27 = vadd.f32 %v2520_v21, %v5344_v5 }
 0x9ab   : > { %v2536_v28 = vand.u32 4294901760, %v5712_v22 }
 0x9ac   : > { %v2534_v30 = vand.u32 4294901760, %v5715_v27 }
 0x9ad   : > { %v2619_v31 = vsub.f32 %v5712_v22, %v2536_v28 }
 0x9ae   : > { %2535 = vmatprep.subr.mxu0 %v2534_v30  ;;  %v2613_v13 = vsub.f32 %v5715_v27, %v2534_v30 }
 0x9af   : > { %2537 = vmatpush1.msra.mxu0 %v2536_v28  ;;  %v2620_v17 = vand.u32 4294901760, %v2619_v31 }
 0x9b0   : > { %2606 = vmatmul.mubr.f32.vlgmr.msra.gmra.mrb[8].mxu0 %v5376_v23  ;;  %v2614_v33 = vand.u32 4294901760, %v2613_v13 }
 0x9b1   : > { %v2621_v6 = vsub.f32 %v2619_v31, %v2620_v17  ;;  %2686 = vmatprep.mubr.f32.mxu0 %v5281_v1 }
 0x9b2   : > { %v2615_v34 = vsub.f32 %v2613_v13, %v2614_v33 }
 0x9b3   : > { %v2622_v35 = vand.u32 4294901760, %v2621_v6 }
 0x9b4   : > { %v2616_v5 = vand.u32 4294901760, %v2615_v34 }
 0x9b6   : > { %2617 = vmatprep.subr.mxu0 %v2616_v5 }
 0x9b7   : > { %2623 = vmatpush1.msra.mxu0 %v2622_v35 }
 0x9b8   : > { %4896 = vmatmul.mubr.msk.f32.vlgmr.msra.gmra.mrb[8].mxu0 %vm6014_vm6, %v5365_v16  ;;  %2696 = vmatprep.subr.mxu0 %v2613_v13  ;;  %vm6018_vm6 = vmmov %vm6017_vm0 }
 0x9b9   : > { %2699 = vmatpush1.msra.mxu0 %v2619_v31  ;;  %2762 = vmatprep.mubr.f32.mxu0 %v5281_v1 }
 0x9ba   : > { %2772 = vmatprep.subr.mxu0 %v2534_v30 }
 0x9c0   : > { %2765 = vmatmul.mubr.f32.vlgmr.msra.gmra.mrb[8].mxu0 %v5369_v18 }
 0x9c1   : > { %2774 = vmatpush1.msra.mxu0 %v2536_v28  ;;  %2837 = vmatprep.mubr.f32.mxu0 %v5281_v1 }
 0x9c2   : > { %2850 = vmatprep.subr.mxu0 %v2614_v33 }
 0x9c8   : > { %2841 = vmatmul.mubr.f32.vlgmr.msra.gmra.mrb[8].mxu0 %v5372_v20 }
 0x9c9   : > { %2854 = vmatpush1.msra.mxu0 %v2620_v17  ;;  %2917 = vmatprep.mubr.f32.mxu0 %v5281_v1 }
 0x9ca   : > { %2926 = vmatprep.subr.mxu0 %v2534_v30 }
 0x9d0   : > { %4897 = vmatmul.mubr.msk.f32.vlgmr.msra.gmra.mrb[8].mxu0 %vm6015_vm10, %v5365_v16  ;;  %vm6019_vm10 = vmmov %vm6017_vm0 }
 0x9d1   : > { %2928 = vmatpush1.msra.mxu0 %v2536_v28  ;;  %2991 = vmatprep.mubr.f32.mxu0 %v5281_v1 }
 0x9d8   : > { %4898 = vmatmul.mubr.msk.f32.vlgmr.msra.gmra.mrb[8].mxu0 %vm6016_vm3, %v5365_v16  ;;  %vm6020_vm3 = vcmp.lt.s32.totalorder %v5329_v3, 16 }
 0x9d9   : > { %3633 = vmatprep.mubr.bf16.mxu0 %v5282_v44 }
 0xaab   : > { %v2994_v37 = vpop.f32.mrb[8].mxu0 }
 0xaac   : > { %v2996_v38 = vpop.f32.mrb[9].mxu0 }
 0xaad   : > { %v2999_v40 = vadd.f32 %v2996_v38, %v2994_v37 }
 0xaaf   : > { %3000 = vadd.xlane.f32.xlu0 %v2999_v40  ;;  %v4905_v40 = vld [vmem:[%s5954_s3 + $0x10] sm:$0xff] }
 0xac5   : > { %3482 = vperm.xlu0 %5112, %v4892_v41  }
 0xb3c   : > { %v3001_v42 = vpop.xlane.xlu0 %3000 }
 0xb3d   : > { %v3002_v43 = vmul.f32 0.001953125, %v3001_v42 }
 0xb3f   : > { %v3003_v45 = vsub.f32 %v5712_v22, %v3002_v43  ;;  %v3004_v46 = vsub.f32 %v5715_v27, %v3002_v43 }
 0xb41   : > { %v3005_v47 = vmul.f32 %v3003_v45, %v3003_v45  ;;  %v3006_v48 = vmul.f32 %v3004_v46, %v3004_v46 }
 0xb43   : > { %v3007_v50 = vand.u32 4294901760, %v3006_v48  ;;  %v3009_v51 = vand.u32 4294901760, %v3005_v47 }
 0xb44   : > { %v3483_v15 = vpop.permute.xlu0 %3482 }
 0xb45   : > { %v3086_v52 = vsub.f32 %v3006_v48, %v3007_v50  ;;  %v3092_v53 = vsub.f32 %v3005_v47, %v3009_v51  ;;  %3008 = vmatprep.subr.mxu1 %v3007_v50 }
 0xb46   : > { %3010 = vmatpush1.msra.mxu1 %v3009_v51 }
 0xb47   : > { %3079 = vmatmul.mubr.f32.vlgmr.msra.gmra.mrb[8].mxu1 %v5376_v23  ;;  %v3087_v57 = vand.u32 4294901760, %v3086_v52  ;;  %v3093_v58 = vand.u32 4294901760, %v3092_v53 }
 0xb48   : > { %3159 = vmatprep.mubr.f32.mxu1 %v5281_v1 }
 0xb49   : > { %v3088_v59 = vsub.f32 %v3086_v52, %v3087_v57  ;;  %v3094_v60 = vsub.f32 %v3092_v53, %v3093_v58 }
 0xb4b   : > { %v3089_v56 = vand.u32 4294901760, %v3088_v59  ;;  %v3095_v55 = vand.u32 4294901760, %v3094_v60 }
 0xb4d   : > { %3090 = vmatprep.subr.mxu1 %v3089_v56 }
 0xb4e   : > { %3096 = vmatpush1.msra.mxu1 %v3095_v55 }
 0xb4f   : > { %4899 = vmatmul.mubr.msk.f32.vlgmr.msra.gmra.mrb[8].mxu1 %vm6017_vm0, %v5365_v16  ;;  %3169 = vmatprep.subr.mxu1 %v3086_v52  ;;  %vm6021_vm0 = vmmov %vm6020_vm3 }
 0xb50   : > { %3172 = vmatpush1.msra.mxu1 %v3092_v53  ;;  %3235 = vmatprep.mubr.f32.mxu1 %v5281_v1 }
 0xb51   : > { %3245 = vmatprep.subr.mxu1 %v3007_v50 }
 0xb57   : > { %3238 = vmatmul.mubr.f32.vlgmr.msra.gmra.mrb[8].mxu1 %v5369_v18 }
 0xb58   : > { %3247 = vmatpush1.msra.mxu1 %v3009_v51  ;;  %3310 = vmatprep.mubr.f32.mxu1 %v5281_v1 }
 0xb59   : > { %3323 = vmatprep.subr.mxu1 %v3087_v57 }
 0xb5f   : > { %3314 = vmatmul.mubr.f32.vlgmr.msra.gmra.mrb[8].mxu1 %v5372_v20 }
 0xb60   : > { %3327 = vmatpush1.msra.mxu1 %v3093_v58  ;;  %3390 = vmatprep.mubr.f32.mxu1 %v5281_v1 }
 0xb61   : > { %3399 = vmatprep.subr.mxu1 %v3007_v50 }
 0xb67   : > { %4900 = vmatmul.mubr.msk.f32.vlgmr.msra.gmra.mrb[8].mxu1 %vm6018_vm6, %v5365_v16  ;;  %vm6022_vm6 = vcmp.lt.s32.totalorder %v5329_v3, 17 }
 0xb68   : > { %3401 = vmatpush1.msra.mxu1 %v3009_v51  ;;  %3464 = vmatprep.mubr.f32.mxu1 %v5281_v1 }
 0xb6f   : > { %4901 = vmatmul.mubr.msk.f32.vlgmr.msra.gmra.mrb[8].mxu1 %vm6019_vm10, %v5365_v16  ;;  %vm6023_vm10 = vmmov %vm6022_vm6 }
 0xb70   : > { %3708 = vmatprep.mubr.f32.mxu1 %v5281_v1 }
 0xc42   : > { %v3467_v62 = vpop.f32.mrb[8].mxu1 }
 0xc43   : > { %v3469_v63 = vpop.f32.mrb[9].mxu1 }
 0xc44   : > { %v3472_v0 = vadd.f32 %v3469_v63, %v3467_v62 }
 0xc46   : > { %3473 = vadd.xlane.f32.xlu1 %v3472_v0 }
 0xc57   : > { %3489 = vperm.xlu1 %5071, %v4893_v4  }
 0xcd3   : > { %v3474_v7 = vpop.xlane.xlu1 %3473 }
 0xcd4   : > { %v3475_v8 = vmul.f32 0.001953125, %v3474_v7 }
 0xcd6   : > { %v3476_v9 = vadd.f32 1e-06, %v3475_v8 }
 0xcd7   : > { %v3490_v24 = vpop.permute.xlu1 %3489 }
 0xcd8   : > { %5253 = vrsqrt.f32 %v3476_v9 }
 0xce2   : > { %v5254_v11 = vpop.eup %5253 }
 0xce3   : > { %v3478_v12 = vmul.f32 %v5254_v11, %v3003_v45  ;;  %v3479_v14 = vmul.f32 %v5254_v11, %v3004_v46 }
 0xce5   : > { %v3485_v19 = vmul.f32 %v3483_v15, %v3478_v12  ;;  %v3486_v21 = vmul.f32 %v3483_v15, %v3479_v14 }
 0xce7   : > { %v3492_v25 = vadd.f32 %v3490_v24, %v3485_v19  ;;  %v3493_v28 = vadd.f32 %v3490_v24, %v3486_v21 }
 0xce9   : > { %v4902_v30 = vmul.f32 -1.442695, %v3492_v25  ;;  %v4903_v31 = vmul.f32 -1.442695, %v3493_v28 }
 0xceb   : > { %5255 = vpow2.f32 %v4902_v30 }
 0xcec   : > { %5257 = vpow2.f32 %v4903_v31 }
 0xcf5   : > { %v5256_v13 = vpop.eup %5255 }
 0xcf6   : > { %v5258_v17 = vpop.eup %5257  ;;  %v3500_v33 = vadd.f32 1.0, %v5256_v13 }
 0xcf7   : > { %v3501_v6 = vadd.f32 1.0, %v5258_v17 }
 0xcf8   : > { %5259 = vrcp.f32 %v3500_v33 }
 0xcf9   : > { %5261 = vrcp.f32 %v3501_v6 }
 0xd02   : > { %v5260_v34 = vpop.eup %5259 }
 0xd03   : > { %v5262_v5 = vpop.eup %5261  ;;  %v5759_v35 = vmul.f32 %v5260_v34, %v3492_v25 }
 0xd04   : > { %v3507_v37 = vmul.f32 %v5262_v5, %v3493_v28 }
 0xd06   : > { %v5158_v38 = vpack.i.bf16 %v3507_v37, %v5759_v35 }
 0xd08   : > { %5159 = vrot.lane.b32.xlu1 %v5158_v38, %s5283_s25  ;;  %5154 = vrot.lane.b32.xlu0 %v5158_v38, %s5284_s26 }
 0xd0c   : > { %5169 = vrot.lane.b32.xlu1 %v5158_v38, %s5287_s29  ;;  %5164 = vrot.lane.b32.xlu0 %v5158_v38, %s5285_s27 }
 0xd10   : > { %5179 = vrot.lane.b32.xlu1 %v5158_v38, %s5289_s5  ;;  %5174 = vrot.lane.b32.xlu0 %v5158_v38, %s5288_s30 }
 0xd14   : > { %5189 = vrot.lane.b32.xlu1 %v5158_v38, %s5286_s28  ;;  %5184 = vrot.lane.b32.xlu0 %v5158_v38, %s5290_s6 }
 0xd18   : > { %3589 = vperm.xlu0 %5112, %v4905_v40  }
 0xd7a   : > { %v5160_v41 = vpop.permute.xlu1 %5159  ;;  %v5155_v42 = vpop.permute.xlu0 %5154 }
 0xd7b   : > { %v5162_v43 = vunpack.i.h.bf16 %v5160_v41  ;;  %v5161_v45 = vunpack.i.l.bf16 %v5160_v41  ;;  %v5157_v46 = vunpack.i.h.bf16 %v5155_v42  ;;  %v5156_v47 = vunpack.i.l.bf16 %v5155_v42 }
 0xd7d   : > { %v3524_v48 = vsel %vm6020_vm3, %v5161_v45, %v5162_v43  ;;  %v3525_v50 = vsel %vm6021_vm0, %v5162_v43, %v5161_v45  ;;  %v3516_v51 = vsel %vm6022_vm6, %v5156_v47, %v5157_v46  ;;  %v3517_v52 = vsel %vm6023_vm10, %v5157_v46, %v5156_v47 }
 0xd7e   : > { %v4907_v53 = vpack.c.bf16 %v3524_v48, %v3516_v51  ;;  %v4910_v57 = vpack.c.bf16 %v3525_v50, %v3517_v52  ;;  %v5170_v58 = vpop.permute.xlu1 %5169  ;;  %v5165_v59 = vpop.permute.xlu0 %5164  ;;  %vm6024_vm3 = vcmp.lt.s32.totalorder %v5329_v3, 1  ;;  %vm6026_vm6 = vcmp.lt.s32.totalorder %v5329_v3, 15  ;;  %v4904_v50 = vld [vmem:[%s5953_s2 + $0x10] sm:$0xff] }
 0xd7f   : > { %v5172_v60 = vunpack.i.h.bf16 %v5170_v58  ;;  %v5171_v56 = vunpack.i.l.bf16 %v5170_v58  ;;  %v5167_v55 = vunpack.i.h.bf16 %v5165_v59  ;;  %v5166_v62 = vunpack.i.l.bf16 %v5165_v59  ;;  %vm6025_vm0 = vmmov %vm6024_vm3 }
 0xd80   : > { %4908 = vmatprep.subr.msk.bf16.mxu0 %vm5466_vm1, %v4907_v53  ;;  %vm6027_vm10 = vmmov %vm6026_vm6  ;;  %v3576_v52 = vpack.c.bf16 %v4904_v50, %v4904_v50 }
 0xd81   : > { %v3540_v63 = vsel %vm6024_vm3, %v5171_v56, %v5172_v60  ;;  %v3541_v0 = vsel %vm6025_vm0, %v5172_v60, %v5171_v56  ;;  %v3532_v4 = vsel %vm6026_vm6, %v5166_v62, %v5167_v55  ;;  %v3533_v7 = vsel %vm6027_vm10, %v5167_v55, %v5166_v62  ;;  %4911 = vmatpush1.bf16.msk.msra.mxu0 %vm5472_vm2, %v4910_v57 }
 0xd82   : > { %v4913_v8 = vpack.c.bf16 %v3540_v63, %v3532_v4  ;;  %v4916_v9 = vpack.c.bf16 %v3541_v0, %v3533_v7  ;;  %v5180_v11 = vpop.permute.xlu1 %5179  ;;  %v5175_v12 = vpop.permute.xlu0 %5174  ;;  %vm6028_vm3 = vcmp.lt.s32.totalorder %v5329_v3, 127  ;;  %vm6030_vm6 = vcmp.lt.s32.totalorder %v5329_v3, 111 }
 0xd83   : > { %v5177_v14 = vunpack.i.h.bf16 %v5175_v12  ;;  %v5176_v15 = vunpack.i.l.bf16 %v5175_v12  ;;  %v5182_v19 = vunpack.i.h.bf16 %v5180_v11  ;;  %v5181_v21 = vunpack.i.l.bf16 %v5180_v11  ;;  %vm6029_vm0 = vmmov %vm6028_vm3 }
 0xd84   : > { %4914 = vmatprep.subr.msk.bf16.mxu0 %vm5506_vm11, %v4913_v8  ;;  %vm6031_vm10 = vmmov %vm6030_vm6 }
 0xd85   : > { %v3548_v24 = vsel %vm6028_vm3, %v5176_v15, %v5177_v14  ;;  %v3549_v25 = vsel %vm6029_vm0, %v5177_v14, %v5176_v15  ;;  %4917 = vmatpush1.bf16.msk.msra.mxu0 %vm5513_vm15, %v4916_v9  ;;  %v3556_v5 = vsel %vm1313_vm13, %v5181_v21, %v5182_v19  ;;  %v3557_v38 = vsel %vm1313_vm13, %v5182_v19, %v5181_v21 }
 0xd86   : > { %v4919_v28 = vpack.c.bf16 %v3549_v25, %v3507_v37  ;;  %v4922_v30 = vpack.c.bf16 %v3548_v24, %v5759_v35  ;;  %v5190_v31 = vpop.permute.xlu1 %5189  ;;  %v5185_v13 = vpop.permute.xlu0 %5184  ;;  %vm6032_vm3 = vcmask 1043456   ;;  %v4895_v24 = vld [vmem:[%s5952_s1 + $0x38] sm:$0xff] }
 0xd87   : > { %v5192_v17 = vunpack.i.h.bf16 %v5190_v31  ;;  %v5191_v33 = vunpack.i.l.bf16 %v5190_v31  ;;  %v5187_v6 = vunpack.i.h.bf16 %v5185_v13  ;;  %v5186_v34 = vunpack.i.l.bf16 %v5185_v13  ;;  %vm6033_vm0 = vmmov %vm6032_vm3 }
 0xd88   : > { %4920 = vmatprep.subr.msk.bf16.mxu0 %vm5528_vm7, %v4919_v28 }
 0xd89   : > { %v3572_v37 = vsel %vm6030_vm6, %v5191_v33, %v5192_v17  ;;  %v3573_v35 = vsel %vm6031_vm10, %v5192_v17, %v5191_v33  ;;  %v3564_v40 = vsel %vm1326_vm8, %v5186_v34, %v5187_v6  ;;  %v3565_v41 = vsel %vm1326_vm8, %v5187_v6, %v5186_v34  ;;  %4923 = vmatpush1.bf16.msk.msra.mxu0 %vm5538_vm9, %v4922_v30 }
 0xd8a   : > { %v3575_v42 = vsel %vm5555_vm12, %v3573_v35, 0.0  ;;  %v4925_v43 = vpack.c.bf16 %v3565_v41, %v3557_v38  ;;  %v4928_v45 = vpack.c.bf16 %v3564_v40, %v3556_v5  ;;  %v3574_v46 = vsel %vm5481_vm5, %v3572_v37, 0.0 }
 0xd8b   : > { %v3586_v47 = vpack.c.bf16 %v3575_v42, %v3575_v42  ;;  %v3585_v48 = vpack.c.bf16 %v3574_v46, %v3574_v46  ;;  %vm6034_vm6 = vcmask 588800   ;;  %vm6035_vm10 = vcmask 64512  }
 0xd8c   : > { %4926 = vmatprep.subr.msk.bf16.mxu0 %vm5579_vm14, %v4925_v43 }
 0xd8d   : > { %4929 = vmatpush1.bf16.msk.msra.mxu0 %vm5586_vm4, %v4928_v45  ;;  %v3596_v51 = vsel %vm6033_vm0, %v3585_v48, 0 }
 0xd8e   : > { %4930 = vmatprep.subr.msk.bf16.mxu0 %vm6032_vm3, %v3586_v47  ;;  %vm6036_vm3 = vmmov %vm6035_vm10 }
 0xd8f   : > { %vm6037_vm0 = vmmov %vm6036_vm3 }
 0xd91   : > { %3610 = vmatpush1.bf16.msra.mxu0 %v3596_v51 }
 0xd94   : > { %4931 = vmatmul.mubr.msk.bf16.vlgmr.msra.gmra.mrb[12].mxu0 %vm6034_vm6, %v3576_v52  ;;  %vm6038_vm6 = vmmov %vm6037_vm0 }
 0xd95   : > { %4181 = vmatprep.mubr.f32.mxu0 %v5281_v1 }
 0xd97   : > { %v3590_v53 = vpop.permute.xlu0 %3589 }
 0xe67   : > { %v3635_v57 = vpop.f32.mrb[12].mxu0 }
 0xe68   : > { %v3636_v58 = vadd.f32 %v3635_v57, %v3590_v53  ;;  %v3637_v59 = vpop.f32.mrb[13].mxu0 }
 0xe69   : > { %v3638_v60 = vadd.f32 %v3637_v59, %v3590_v53  ;;  %v3639_v56 = vpop.f32.mrb[14].mxu0 }
 0xe6a   : > { %v3644_v55 = vand.u32 4294901760, %v3636_v58  ;;  %v3640_v62 = vpop.f32.mrb[15].mxu0 }
 0xe6b   : > { %v3642_v63 = vand.u32 4294901760, %v3638_v60 }
 0xe6c   : > { %v3727_v0 = vsub.f32 %v3636_v58, %v3644_v55 }
 0xe6d   : > { %v3721_v4 = vsub.f32 %v3638_v60, %v3642_v63  ;;  %3643 = vmatprep.subr.mxu1 %v3642_v63 }
 0xe6e   : > { %v3728_v7 = vand.u32 4294901760, %v3727_v0  ;;  %3645 = vmatpush1.msra.mxu1 %v3644_v55 }
 0xe6f   : > { %3714 = vmatmul.mubr.f32.vlgmr.msra.gmra.mrb[10].mxu1 %v5376_v23  ;;  %v3722_v8 = vand.u32 4294901760, %v3721_v4 }
 0xe70   : > { %v3729_v9 = vsub.f32 %v3727_v0, %v3728_v7  ;;  %3794 = vmatprep.mubr.f32.mxu1 %v5281_v1 }
 0xe71   : > { %v3723_v11 = vsub.f32 %v3721_v4, %v3722_v8 }
 0xe72   : > { %v3730_v14 = vand.u32 4294901760, %v3729_v9  ;;  %v4941_v9 = vld [vmem:[%s5954_s3 + $0x18] sm:$0xff] }
 0xe73   : > { %v3724_v12 = vand.u32 4294901760, %v3723_v11 }
 0xe75   : > { %3725 = vmatprep.subr.mxu1 %v3724_v12 }
 0xe76   : > { %3731 = vmatpush1.msra.mxu1 %v3730_v14 }
 0xe77   : > { %4932 = vmatmul.mubr.msk.f32.vlgmr.msra.gmra.mrb[10].mxu1 %vm6035_vm10, %v5365_v16  ;;  %3804 = vmatprep.subr.mxu1 %v3721_v4  ;;  %vm6039_vm10 = vmmov %vm6037_vm0 }
 0xe78   : > { %3807 = vmatpush1.msra.mxu1 %v3727_v0  ;;  %3870 = vmatprep.mubr.f32.mxu1 %v5281_v1 }
 0xe79   : > { %3880 = vmatprep.subr.mxu1 %v3642_v63 }
 0xe7f   : > { %3873 = vmatmul.mubr.f32.vlgmr.msra.gmra.mrb[10].mxu1 %v5369_v18 }
 0xe80   : > { %3882 = vmatpush1.msra.mxu1 %v3644_v55  ;;  %3945 = vmatprep.mubr.f32.mxu1 %v5281_v1 }
 0xe81   : > { %3958 = vmatprep.subr.mxu1 %v3722_v8 }
 0xe87   : > { %3949 = vmatmul.mubr.f32.vlgmr.msra.gmra.mrb[10].mxu1 %v5372_v20 }
 0xe88   : > { %3962 = vmatpush1.msra.mxu1 %v3728_v7  ;;  %4025 = vmatprep.mubr.f32.mxu1 %v5281_v1 }
 0xe89   : > { %4034 = vmatprep.subr.mxu1 %v3642_v63 }
 0xe8f   : > { %4933 = vmatmul.mubr.msk.f32.vlgmr.msra.gmra.mrb[10].mxu1 %vm6036_vm3, %v5365_v16  ;;  %vm6040_vm3 = vmmov %vm6037_vm0 }
 0xe90   : > { %4036 = vmatpush1.msra.mxu1 %v3644_v55  ;;  %4099 = vmatprep.mubr.f32.mxu1 %v5281_v1 }
 0xe97   : > { %4934 = vmatmul.mubr.msk.f32.vlgmr.msra.gmra.mrb[10].mxu1 %vm6037_vm0, %v5365_v16  ;;  %vm6041_vm0 = vcmp.lt.s32.totalorder %v5329_v3, 16 }
 0xe98   : > { %4741 = vmatprep.mubr.bf16.mxu1 %v5282_v44 }
 0xf6a   : > { %v4102_v15 = vpop.f32.mrb[10].mxu1 }
 0xf6b   : > { %v4104_v19 = vpop.f32.mrb[11].mxu1 }
 0xf6c   : > { %v4107_v21 = vadd.f32 %v4104_v19, %v4102_v15 }
 0xf6e   : > { %4108 = vadd.xlane.f32.xlu1 %v4107_v21 }
 0xf7f   : > { %4597 = vperm.xlu1 %5071, %v4895_v24  }
 0xffb   : > { %v4109_v25 = vpop.xlane.xlu1 %4108 }
 0xffc   : > { %v4110_v28 = vmul.f32 0.001953125, %v4109_v25 }
 0xffe   : > { %v4111_v30 = vsub.f32 %v3636_v58, %v4110_v28  ;;  %v4112_v31 = vsub.f32 %v3638_v60, %v4110_v28 }
0x1000   : > { %v4113_v13 = vmul.f32 %v4111_v30, %v4111_v30  ;;  %v4114_v17 = vmul.f32 %v4112_v31, %v4112_v31 }
0x1002   : > { %v4115_v33 = vand.u32 4294901760, %v4114_v17  ;;  %v4117_v6 = vand.u32 4294901760, %v4113_v13 }
0x1004   : > { %v4194_v34 = vsub.f32 %v4114_v17, %v4115_v33  ;;  %v4200_v5 = vsub.f32 %v4113_v13, %v4117_v6  ;;  %4116 = vmatprep.subr.mxu0 %v4115_v33 }
0x1005   : > { %4118 = vmatpush1.msra.mxu0 %v4117_v6 }
0x1006   : > { %4187 = vmatmul.mubr.f32.vlgmr.msra.gmra.mrb[10].mxu0 %v5376_v23  ;;  %v4195_v44 = vand.u32 4294901760, %v4194_v34  ;;  %v4201_v38 = vand.u32 4294901760, %v4200_v5 }
0x1007   : > { %4267 = vmatprep.mubr.f32.mxu0 %v5281_v1 }
0x1008   : > { %v4196_v37 = vsub.f32 %v4194_v34, %v4195_v44  ;;  %v4202_v35 = vsub.f32 %v4200_v5, %v4201_v38 }
0x100a   : > { %v4197_v40 = vand.u32 4294901760, %v4196_v37  ;;  %v4203_v41 = vand.u32 4294901760, %v4202_v35 }
0x100c   : > { %4198 = vmatprep.subr.mxu0 %v4197_v40 }
0x100d   : > { %4204 = vmatpush1.msra.mxu0 %v4203_v41 }
0x100e   : > { %4935 = vmatmul.mubr.msk.f32.vlgmr.msra.gmra.mrb[10].mxu0 %vm6038_vm6, %v5365_v16  ;;  %4277 = vmatprep.subr.mxu0 %v4194_v34  ;;  %vm6042_vm6 = vmmov %vm6041_vm0 }
0x100f   : > { %4280 = vmatpush1.msra.mxu0 %v4200_v5  ;;  %4343 = vmatprep.mubr.f32.mxu0 %v5281_v1 }
0x1010   : > { %4353 = vmatprep.subr.mxu0 %v4115_v33 }
0x1016   : > { %4346 = vmatmul.mubr.f32.vlgmr.msra.gmra.mrb[10].mxu0 %v5369_v18 }
0x1017   : > { %4355 = vmatpush1.msra.mxu0 %v4117_v6  ;;  %4418 = vmatprep.mubr.f32.mxu0 %v5281_v1 }
0x1018   : > { %4431 = vmatprep.subr.mxu0 %v4195_v44 }
0x101e   : > { %4422 = vmatmul.mubr.f32.vlgmr.msra.gmra.mrb[10].mxu0 %v5372_v20  ;;  %v4894_v20 = vld [vmem:[%s5952_s1 + $0x30] sm:$0xff] }
0x101f   : > { %4435 = vmatpush1.msra.mxu0 %v4201_v38  ;;  %4498 = vmatprep.mubr.f32.mxu0 %v5281_v1 }
0x1020   : > { %4507 = vmatprep.subr.mxu0 %v4115_v33 }
0x1026   : > { %4936 = vmatmul.mubr.msk.f32.vlgmr.msra.gmra.mrb[10].mxu0 %vm6039_vm10, %v5365_v16  ;;  %vm6043_vm10 = vcmp.lt.s32.totalorder %v5329_v3, 17 }
0x1027   : > { %4509 = vmatpush1.msra.mxu0 %v4117_v6  ;;  %4572 = vmatprep.mubr.f32.mxu0 %v5281_v1 }
0x102e   : > { %4937 = vmatmul.mubr.msk.f32.vlgmr.msra.gmra.mrb[10].mxu0 %vm6040_vm3, %v5365_v16  ;;  %v4598_v16 = vpop.permute.xlu1 %4597  ;;  %vm6044_vm3 = vmmov %vm6043_vm10 }
0x1101   : > { %v4575_v18 = vpop.f32.mrb[10].mxu0 }
0x1102   : > { %v4577_v23 = vpop.f32.mrb[11].mxu0 }
0x1103   : > { %v4580_v42 = vadd.f32 %v4577_v23, %v4575_v18 }
0x1105   : > { %4581 = vadd.xlane.f32.xlu0 %v4580_v42 }
0x111b   : > { %4590 = vperm.xlu0 %5112, %v4894_v20  }
0x1192   : > { %v4582_v43 = vpop.xlane.xlu0 %4581 }
0x1193   : > { %v4583_v45 = vmul.f32 0.001953125, %v4582_v43 }
0x1195   : > { %v4584_v46 = vadd.f32 1e-06, %v4583_v45 }
0x1197   : > { %5263 = vrsqrt.f32 %v4584_v46 }
0x119a   : > { %v4591_v1 = vpop.permute.xlu0 %4590 }
0x11a1   : > { %v5264_v47 = vpop.eup %5263 }
0x11a2   : > { %v4586_v48 = vmul.f32 %v5264_v47, %v4111_v30  ;;  %v4587_v50 = vmul.f32 %v5264_v47, %v4112_v31 }
0x11a4   : > { %v4593_v51 = vmul.f32 %v4591_v1, %v4586_v48  ;;  %v4594_v52 = vmul.f32 %v4591_v1, %v4587_v50 }
0x11a6   : > { %v4600_v53 = vadd.f32 %v4598_v16, %v4593_v51  ;;  %v4601_v57 = vadd.f32 %v4598_v16, %v4594_v52 }
0x11a8   : > { %v4938_v58 = vmul.f32 -1.442695, %v4600_v53  ;;  %v4939_v59 = vmul.f32 -1.442695, %v4601_v57 }
0x11aa   : > { %5265 = vpow2.f32 %v4938_v58 }
0x11ab   : > { %5267 = vpow2.f32 %v4939_v59 }
0x11b4   : > { %v5266_v60 = vpop.eup %5265 }
0x11b5   : > { %v5268_v56 = vpop.eup %5267  ;;  %v4608_v55 = vadd.f32 1.0, %v5266_v60 }
0x11b6   : > { %v4609_v62 = vadd.f32 1.0, %v5268_v56 }
0x11b7   : > { %5269 = vrcp.f32 %v4608_v55 }
0x11b8   : > { %5271 = vrcp.f32 %v4609_v62 }
0x11c1   : > { %v5270_v63 = vpop.eup %5269 }
0x11c2   : > { %v5272_v0 = vpop.eup %5271  ;;  %v5868_v4 = vmul.f32 %v5270_v63, %v4600_v53 }
0x11c3   : > { %v4615_v7 = vmul.f32 %v5272_v0, %v4601_v57 }
0x11c5   : > { %v5198_v8 = vpack.i.bf16 %v4615_v7, %v5868_v4 }
0x11c7   : > { %5199 = vrot.lane.b32.xlu0 %v5198_v8, %s5283_s25  ;;  %5194 = vrot.lane.b32.xlu1 %v5198_v8, %s5284_s26 }
0x11cb   : > { %5209 = vrot.lane.b32.xlu0 %v5198_v8, %s5287_s29  ;;  %5204 = vrot.lane.b32.xlu1 %v5198_v8, %s5285_s27  ;;  %s197_s29 = scalar_lea.vmem %s5955_s4, %s4970_s17 }
0x11cf   : > { %5219 = vrot.lane.b32.xlu0 %v5198_v8, %s5289_s5  ;;  %5214 = vrot.lane.b32.xlu1 %v5198_v8, %s5288_s30 }
0x11d3   : > { %5229 = vrot.lane.b32.xlu0 %v5198_v8, %s5286_s28  ;;  %5224 = vrot.lane.b32.xlu1 %v5198_v8, %s5290_s6 }
0x11d7   : > { %4697 = vperm.xlu1 %5071, %v4941_v9  }
0x1239   : > { %v5200_v11 = vpop.permute.xlu0 %5199  ;;  %v5195_v12 = vpop.permute.xlu1 %5194 }
0x123a   : > { %v5202_v14 = vunpack.i.h.bf16 %v5200_v11  ;;  %v5201_v15 = vunpack.i.l.bf16 %v5200_v11  ;;  %v5197_v19 = vunpack.i.h.bf16 %v5195_v12  ;;  %v5196_v21 = vunpack.i.l.bf16 %v5195_v12 }
0x123c   : > { %v4632_v24 = vsel %vm6041_vm0, %v5201_v15, %v5202_v14  ;;  %v4633_v25 = vsel %vm6042_vm6, %v5202_v14, %v5201_v15  ;;  %v4624_v28 = vsel %vm6043_vm10, %v5196_v21, %v5197_v19  ;;  %v4625_v30 = vsel %vm6044_vm3, %v5197_v19, %v5196_v21 }
0x123d   : > { %v4943_v31 = vpack.c.bf16 %v4632_v24, %v4624_v28  ;;  %v4946_v13 = vpack.c.bf16 %v4633_v25, %v4625_v30  ;;  %v5210_v17 = vpop.permute.xlu0 %5209  ;;  %v5205_v33 = vpop.permute.xlu1 %5204  ;;  %vm6045_vm0 = vcmp.lt.s32.totalorder %v5329_v3, 1  ;;  %vm6047_vm10 = vcmp.lt.s32.totalorder %v5329_v3, 15 }
0x123e   : > { %v5212_v6 = vunpack.i.h.bf16 %v5210_v17  ;;  %v5211_v34 = vunpack.i.l.bf16 %v5210_v17  ;;  %v5207_v5 = vunpack.i.h.bf16 %v5205_v33  ;;  %v5206_v44 = vunpack.i.l.bf16 %v5205_v33  ;;  %vm6046_vm6 = vmmov %vm6045_vm0 }
0x123f   : > { %4944 = vmatprep.subr.msk.bf16.mxu1 %vm5466_vm1, %v4943_v31  ;;  %vm6048_vm3 = vmmov %vm6047_vm10  ;;  %vm6049_vm1 = vcmp.lt.s32.totalorder %v5329_v3, 127 }
0x1240   : > { %v4648_v38 = vsel %vm6045_vm0, %v5211_v34, %v5212_v6  ;;  %v4649_v37 = vsel %vm6046_vm6, %v5212_v6, %v5211_v34  ;;  %v4640_v35 = vsel %vm6047_vm10, %v5206_v44, %v5207_v5  ;;  %v4641_v40 = vsel %vm6048_vm3, %v5207_v5, %v5206_v44  ;;  %4947 = vmatpush1.bf16.msk.msra.mxu1 %vm5472_vm2, %v4946_v13  ;;  %vm6050_vm0 = vmmov %vm6049_vm1 }
0x1241   : > { %v4949_v41 = vpack.c.bf16 %v4648_v38, %v4640_v35  ;;  %v4952_v18 = vpack.c.bf16 %v4649_v37, %v4641_v40  ;;  %v5220_v23 = vpop.permute.xlu0 %5219  ;;  %v5215_v32 = vpop.permute.xlu1 %5214  ;;  %vm6051_vm2 = vcmp.lt.s32.totalorder %v5329_v3, 111  ;;  %v4940_v3 = vld [vmem:[%s5953_s2 + $0x18] sm:$0xff] }
0x1242   : > { %v5217_v42 = vunpack.i.h.bf16 %v5215_v32  ;;  %v5216_v20 = vunpack.i.l.bf16 %v5215_v32  ;;  %v5222_v43 = vunpack.i.h.bf16 %v5220_v23  ;;  %v5221_v45 = vunpack.i.l.bf16 %v5220_v23 }
0x1243   : > { %4950 = vmatprep.subr.msk.bf16.mxu1 %vm5506_vm11, %v4949_v41  ;;  %vm6052_vm11 = vmmov %vm6051_vm2  ;;  %v4684_v10 = vpack.c.bf16 %v4940_v3, %v4940_v3 }
0x1244   : > { %v4656_v46 = vsel %vm6049_vm1, %v5216_v20, %v5217_v42  ;;  %v4657_v47 = vsel %vm6050_vm0, %v5217_v42, %v5216_v20  ;;  %4953 = vmatpush1.bf16.msk.msra.mxu1 %vm5513_vm15, %v4952_v18  ;;  %v4664_v49 = vsel %vm1313_vm13, %v5221_v45, %v5222_v43  ;;  %v4665_v57 = vsel %vm1313_vm13, %v5222_v43, %v5221_v45 }
0x1245   : > { %v4955_v36 = vpack.c.bf16 %v4657_v47, %v4615_v7  ;;  %v4958_v48 = vpack.c.bf16 %v4656_v46, %v5868_v4  ;;  %v5230_v50 = vpop.permute.xlu0 %5229  ;;  %v5225_v1 = vpop.permute.xlu1 %5224  ;;  %vm6055_vm13 = vcmask 588800  }
0x1246   : > { %v5232_v51 = vunpack.i.h.bf16 %v5230_v50  ;;  %v5231_v52 = vunpack.i.l.bf16 %v5230_v50  ;;  %v5227_v16 = vunpack.i.h.bf16 %v5225_v1  ;;  %v5226_v53 = vunpack.i.l.bf16 %v5225_v1 }
0x1247   : > { %4956 = vmatprep.subr.msk.bf16.mxu1 %vm5528_vm7, %v4955_v36 }
0x1248   : > { %v4680_v54 = vsel %vm6051_vm2, %v5231_v52, %v5232_v51  ;;  %v4681_v58 = vsel %vm6052_vm11, %v5232_v51, %v5231_v52  ;;  %v4672_v59 = vsel %vm1326_vm8, %v5226_v53, %v5227_v16  ;;  %v4673_v60 = vsel %vm1326_vm8, %v5227_v16, %v5226_v53  ;;  %4959 = vmatpush1.bf16.msk.msra.mxu1 %vm5538_vm9, %v4958_v48 }
0x1249   : > { %v4683_v56 = vsel %vm5555_vm12, %v4681_v58, 0.0  ;;  %v4961_v61 = vpack.c.bf16 %v4673_v60, %v4665_v57  ;;  %v4964_v55 = vpack.c.bf16 %v4672_v59, %v4664_v49  ;;  %v4682_v62 = vsel %vm5481_vm5, %v4680_v54, 0.0 }
0x124a   : > { %v4694_v63 = vpack.c.bf16 %v4683_v56, %v4683_v56  ;;  %v4693_v0 = vpack.c.bf16 %v4682_v62, %v4682_v62  ;;  %vm6053_vm8 = vcmask 1043456  }
0x124b   : > { %4962 = vmatprep.subr.msk.bf16.mxu1 %vm5579_vm14, %v4961_v61  ;;  %vm6054_vm12 = vmmov %vm6053_vm8 }
0x124c   : > { %4965 = vmatpush1.bf16.msk.msra.mxu1 %vm5586_vm4, %v4964_v55  ;;  %v4704_v2 = vsel %vm6054_vm12, %v4693_v0, 0 }
0x124d   : > { %4966 = vmatprep.subr.msk.bf16.mxu1 %vm6053_vm8, %v4694_v63 }
0x1250   : > { %4718 = vmatpush1.bf16.msra.mxu1 %v4704_v2 }
0x1253   : > { %4967 = vmatmul.mubr.msk.bf16.vlgmr.msra.gmra.mrb[12].mxu1 %vm6055_vm13, %v4684_v10 }
0x1256   : > { %v4698_v39 = vpop.permute.xlu1 %4697 }
0x1326   : > { %v4743_v4 = vpop.f32.mrb[12].mxu1 }
0x1327   : > { %v4744_v26 = vadd.f32 %v4743_v4, %v4698_v39  ;;  %v4745_v7 = vpop.f32.mrb[13].mxu1 }
0x1328   : > { %v4746_v29 = vadd.f32 %v4745_v7, %v4698_v39  ;;  %v4747_v8 = vpop.f32.mrb[14].mxu1 }
0x1329   : > { %v4750_v9 = vadd.f32 %v4744_v26, %v5712_v22  ;;  %v4748_v11 = vpop.f32.mrb[15].mxu1 }
0x132a   : > { %v4751_v12 = vadd.f32 %v4746_v29, %v5715_v27 }
0x132b   : > { %4752 = vst [vmem:[%s197_s29] sm:$0xff] %v4750_v9 }
0x132c   : > { %4753 = vst [vmem:[%s197_s29 + $0x8] sm:$0xff] %v4751_v12 }
0x132d PF: > { %s14_s15 = sadd.s32 1, %s5279_s15  }
0x132e   : > { %p11_p4 = scmp.ge.s32.totalorder %s14_s15, 4  }
0x1330   :  { %13 = sbr.rel (!%p11_p4) target bundleno = 1 (0x1), region = 79 }

</bundles_post_ra>
